<compile_context>
chip_gen: v5e
topology: v5e:2x2
jax: 0.10.0
libtpu: 0.0.40
codegen_flags: <defaults>
</compile_context>

<pallas_src>
import functools

import jax
import jax.numpy as jnp
from jax.experimental import pallas as pl
from jax.experimental.pallas import tpu as pltpu

EPS = 1e-5     # PyTorch BatchNorm2d default eps
LANE = 128     # TPU lane width


# ------------------------------ small helpers ------------------------------ #

def _rup(x, m=LANE):
    return ((x + m - 1) // m) * m


def _compiler_params(dimension_semantics):
    """Build pltpu.CompilerParams, degrading gracefully on older jax versions."""
    cls = getattr(pltpu, "CompilerParams", None) or getattr(pltpu, "TPUCompilerParams", None)
    if cls is None:
        return None
    for kwargs in ({"dimension_semantics": dimension_semantics,
                    "vmem_limit_bytes": 32 * 1024 * 1024},
                   {"dimension_semantics": dimension_semantics},
                   {}):
        try:
            return cls(**kwargs)
        except TypeError:
            continue
    return None


def _pick_tile(m, img_w, target):
    """Largest multiple of img_w that divides m and is <= target (>= img_w)."""
    t = max(img_w, (target // img_w) * img_w)
    while t >= img_w:
        if m % t == 0:
            return t
        t -= img_w
    return m


# ----------------------------- Pallas kernels ------------------------------ #

def _conv3x3_stats_kernel(xm_ref, xc_ref, xp_ref, w_ref, o_ref, stats_ref, *, img_w):
    """Pre-BN 3x3 conv on a (TILE, Cin_p) pixel tile + per-channel sum / sum_sq.

    xm/xc/xp : dh = -1 / 0 / +1 vertically shifted input tiles (bf16).
    w_ref    : (9, Cin_p, Cout_p) resident bf16 weights, tap index = kh*3 + kw.
    o_ref    : (TILE, Cout_p) f32 pre-BN conv output for this tile.
    stats_ref: (2, Cout_p) f32 accumulator, resident across the whole grid.
    """
    tile, cout_p = o_ref.shape
    acc = jnp.zeros((tile, cout_p), jnp.float32)

    for ti, xref in enumerate((xm_ref, xc_ref, xp_ref)):          # dh = -1, 0, +1
        x = xref[...]                                             # (TILE, Cin_p) bf16
        # column index of each flattened pixel (tiles are aligned to w == 0)
        w_col = jax.lax.broadcasted_iota(jnp.int32, x.shape, 0) % img_w
        zero = jnp.zeros_like(x)
        # neighbour at w-1 (dw = -1): shift rows down by one, zero at w == 0
        left = jnp.where(w_col == 0, zero,
                         jnp.concatenate([zero[:1], x[:-1]], axis=0))
        # neighbour at w+1 (dw = +1): shift rows up by one, zero at w == W-1
        right = jnp.where(w_col == img_w - 1, zero,
                          jnp.concatenate([x[1:], zero[:1]], axis=0))
        for dwi, v in enumerate((left, x, right)):                # dw = -1, 0, +1
            acc += jnp.dot(v, w_ref[ti * 3 + dwi],
                           preferred_element_type=jnp.float32)

    o_ref[...] = acc

    # Cross-tile BatchNorm statistics (sum, sum of squares) accumulated in a
    # grid-resident output block ("arbitrary" grid axis).
    @pl.when(pl.program_id(0) == 0)
    def _init():
        stats_ref[...] = jnp.zeros_like(stats_ref)

    s = jnp.sum(acc, axis=0, keepdims=True)
    s2 = jnp.sum(acc * acc, axis=0, keepdims=True)
    stats_ref[...] += jnp.concatenate([s, s2], axis=0)


def _bn_relu_kernel(h_ref, scale_ref, shift_ref, o_ref):
    """out = relu(h * scale + shift)  (scale/shift fold BN mean/var/gamma/beta)."""
    o_ref[...] = jnp.maximum(h_ref[...] * scale_ref[...] + shift_ref[...],
                             0.0).astype(o_ref.dtype)


def _bn_relu_residual_kernel(h_ref, x_ref, w1x1_ref, scale_ref, shift_ref,
                             b1x1_ref, o_ref):
    """out = relu( conv1x1(x) + relu(h * scale + shift) )."""
    hn = jnp.maximum(h_ref[...] * scale_ref[...] + shift_ref[...], 0.0)
    res = jnp.dot(x_ref[...], w1x1_ref[...],
                  preferred_element_type=jnp.float32) + b1x1_ref[...]
    o_ref[...] = jnp.maximum(hn + res, 0.0).astype(o_ref.dtype)


# --------------------------- pallas_call wrappers --------------------------- #

def _conv3x3_stats(xm, xc, xp, w9, img_w, tile):
    m, cin_p = xc.shape
    cout_p = w9.shape[2]
    kernel = functools.partial(_conv3x3_stats_kernel, img_w=img_w)
    act_spec = pl.BlockSpec((tile, cin_p), lambda i: (i, 0))
    return pl.pallas_call(
        kernel,
        out_shape=(jax.ShapeDtypeStruct((m, cout_p), jnp.float32),
                   jax.ShapeDtypeStruct((2, cout_p), jnp.float32)),
        grid=(m // tile,),
        in_specs=[act_spec, act_spec, act_spec,
                  pl.BlockSpec((9, cin_p, cout_p), lambda i: (0, 0, 0))],
        out_specs=(pl.BlockSpec((tile, cout_p), lambda i: (i, 0)),
                   pl.BlockSpec((2, cout_p), lambda i: (0, 0))),
        compiler_params=_compiler_params(("arbitrary",)),   # stats accumulate across tiles
    )(xm, xc, xp, w9)


def _bn_relu(h, scale, shift, tile, out_dtype):
    m, c = h.shape
    return pl.pallas_call(
        _bn_relu_kernel,
        out_shape=jax.ShapeDtypeStruct((m, c), out_dtype),
        grid=(m // tile,),
        in_specs=[pl.BlockSpec((tile, c), lambda i: (i, 0)),
                  pl.BlockSpec((1, c), lambda i: (0, 0)),
                  pl.BlockSpec((1, c), lambda i: (0, 0))],
        out_specs=pl.BlockSpec((tile, c), lambda i: (i, 0)),
        compiler_params=_compiler_params(("parallel",)),
    )(h, scale, shift)


def _bn_relu_residual(h, x_flat, w1x1, scale, shift, b1x1, tile):
    m, c = h.shape
    cin_p = x_flat.shape[1]
    return pl.pallas_call(
        _bn_relu_residual_kernel,
        out_shape=jax.ShapeDtypeStruct((m, c), jnp.float32),
        grid=(m // tile,),
        in_specs=[pl.BlockSpec((tile, c), lambda i: (i, 0)),
                  pl.BlockSpec((tile, cin_p), lambda i: (i, 0)),
                  pl.BlockSpec((cin_p, c), lambda i: (0, 0)),
                  pl.BlockSpec((1, c), lambda i: (0, 0)),
                  pl.BlockSpec((1, c), lambda i: (0, 0)),
                  pl.BlockSpec((1, c), lambda i: (0, 0))],
        out_specs=pl.BlockSpec((tile, c), lambda i: (i, 0)),
        compiler_params=_compiler_params(("parallel",)),
    )(h, x_flat, w1x1, scale, shift, b1x1)


# ------------------------------- glue helpers ------------------------------ #

def _vshift_flat(x_nhwc, dh):
    """y[n, h] = x[n, h + dh] (zero padded at image borders), flattened to (N*H*W, C)."""
    n, h, w, c = x_nhwc.shape
    if dh == 0:
        y = x_nhwc
    else:
        zrow = jnp.zeros((n, 1, w, c), x_nhwc.dtype)
        if dh < 0:
            y = jnp.concatenate([zrow, x_nhwc[:, :h - 1]], axis=1)
        else:
            y = jnp.concatenate([x_nhwc[:, 1:], zrow], axis=1)
    return y.reshape(n * h * w, c)


def _prep_w3x3(w, cin_p, cout_p):
    """(Cout, Cin, 3, 3) torch weight -> (9, Cin_p, Cout_p) bf16, tap = kh*3 + kw."""
    cout, cin = w.shape[0], w.shape[1]
    wt = jnp.transpose(w, (2, 3, 1, 0)).reshape(9, cin, cout)
    wt = jnp.pad(wt, ((0, 0), (0, cin_p - cin), (0, cout_p - cout)))
    return wt.astype(jnp.bfloat16)


def _prep_w1x1(w, cin_p, cout_p):
    cout, cin = w.shape[0], w.shape[1]
    wm = jnp.transpose(w.reshape(cout, cin), (1, 0))
    wm = jnp.pad(wm, ((0, cin_p - cin), (0, cout_p - cout)))
    return wm.astype(jnp.bfloat16)


def _bn_scale_shift(stats, gamma_p, beta_p, m):
    """Fold batch mean/var (from per-channel sum & sum_sq) + affine into scale/shift."""
    mean = stats[0] / m
    var = jnp.maximum(stats[1] / m - mean * mean, 0.0)    # biased variance (torch BN)
    scale = gamma_p * jax.lax.rsqrt(var + EPS)
    shift = beta_p - mean * scale
    cp = scale.shape[0]
    return (scale.reshape(1, cp).astype(jnp.float32),
            shift.reshape(1, cp).astype(jnp.float32))


# ------------------------------- ResBlock ---------------------------------- #

def resblock_forward(x_nchw, params, tile_pixels=128):
    """Pallas implementation of ResBlock.forward (NCHW in/out, training-mode BN)."""
    (w1, b1, g1, be1, w2, b2, g2, be2, w1x1, b1x1) = params
    # Conv biases that feed straight into BatchNorm are exactly cancelled by the
    # batch-mean subtraction -> intentionally unused (removes a full-tile VPU add).
    del b1, b2

    n, cin, height, width = x_nchw.shape
    cout = w1.shape[0]
    m = n * height * width
    cin_p, cout_p = _rup(cin), _rup(cout)
    tile = _pick_tile(m, width, tile_pixels)

    x_nhwc = jnp.transpose(x_nchw, (0, 2, 3, 1))
    x_pad = jnp.pad(x_nhwc, ((0, 0), (0, 0), (0, 0), (0, cin_p - cin)))
    x_bf = x_pad.astype(jnp.bfloat16)

    # ---- conv1 (3x3) + batch stats, then BN1 + ReLU ----
    h1, stats1 = _conv3x3_stats(_vshift_flat(x_bf, -1), x_bf.reshape(m, cin_p),
                                _vshift_flat(x_bf, +1),
                                _prep_w3x3(w1, cin_p, cout_p), width, tile)
    scale1, shift1 = _bn_scale_shift(stats1,
                                     jnp.pad(g1, (0, cout_p - cout)),
                                     jnp.pad(be1, (0, cout_p - cout)), m)
    y1 = _bn_relu(h1, scale1, shift1, tile, jnp.bfloat16)          # (m, cout_p) bf16

    # ---- conv2 (3x3) + batch stats ----
    y1_nhwc = y1.reshape(n, height, width, cout_p)
    h2, stats2 = _conv3x3_stats(_vshift_flat(y1_nhwc, -1), y1.reshape(m, cout_p),
                                _vshift_flat(y1_nhwc, +1),
                                _prep_w3x3(w2, cout_p, cout_p), width, tile)
    scale2, shift2 = _bn_scale_shift(stats2,
                                     jnp.pad(g2, (0, cout_p - cout)),
                                     jnp.pad(be2, (0, cout_p - cout)), m)

    # ---- BN2 + ReLU + conv1x1 residual + add + final ReLU (fused) ----
    out = _bn_relu_residual(
        h2, x_bf.reshape(m, cin_p), _prep_w1x1(w1x1, cin_p, cout_p),
        scale2, shift2,
        jnp.pad(b1x1, (0, cout_p - cout)).reshape(1, cout_p).astype(jnp.float32),
        tile)

    out = out.reshape(n, height, width, cout_p)[..., :cout]
    return jnp.transpose(out, (0, 3, 1, 2))                        # back to NCHW


# ------------------------- pure-JAX reference check ------------------------ #

def _ref_forward(x_nchw, params):
    (w1, b1, g1, be1, w2, b2, g2, be2, w1x1, b1x1) = params
    x = jnp.transpose(x_nchw, (0, 2, 3, 1))

    def conv(inp, wgt, b):
        whwio = jnp.transpose(wgt, (2, 3, 1, 0))
        y = jax.lax.conv_general_dilated(
            inp, whwio, (1, 1), "SAME",
            dimension_numbers=("NHWC", "HWIO", "NHWC"),
            precision=jax.lax.Precision.HIGHEST)
        return y + b

    def bn(h, g, be):
        mean = jnp.mean(h, axis=(0, 1, 2), keepdims=True)
        var = jnp.mean((h - mean) ** 2, axis=(0, 1, 2), keepdims=True)
        return (h - mean) * jax.lax.rsqrt(var + EPS) * g + be

    h = jax.nn.relu(bn(conv(x, w1, b1), g1, be1))
    h = jax.nn.relu(bn(conv(h, w2, b2), g2, be2))
    res = conv(x, w1x1, b1x1)
    return jnp.transpose(jax.nn.relu(res + h), (0, 3, 1, 2))


# ----------------------------------- main ----------------------------------- #

if __name__ == "__main__":
    N, Cin, H, W = 2, 4, 16, 16
    Cout = 8

    key = jax.random.PRNGKey(0)
    ks = jax.random.split(key, 7)
    x = jax.random.normal(ks[0], (N, Cin, H, W), jnp.float32)

    # Deterministic synthetic parameters (PyTorch shapes).
    w1 = jax.random.normal(ks[1], (Cout, Cin, 3, 3), jnp.float32) * 0.1
    b1 = jax.random.normal(ks[2], (Cout,), jnp.float32) * 0.1
    w2 = jax.random.normal(ks[3], (Cout, Cout, 3, 3), jnp.float32) * 0.1
    b2 = jax.random.normal(ks[4], (Cout,), jnp.float32) * 0.1
    w1x1 = jax.random.normal(ks[5], (Cout, Cin, 1, 1), jnp.float32) * 0.1
    b1x1 = jax.random.normal(ks[6], (Cout,), jnp.float32) * 0.1
    # BatchNorm affine params at PyTorch init (gamma=1, beta=0).
    g1 = jnp.ones((Cout,), jnp.float32); be1 = jnp.zeros((Cout,), jnp.float32)
    g2 = jnp.ones((Cout,), jnp.float32); be2 = jnp.zeros((Cout,), jnp.float32)

    params = (w1, b1, g1, be1, w2, b2, g2, be2, w1x1, b1x1)

    out = jax.jit(resblock_forward)(x, params)
    out = jax.block_until_ready(out)
    assert out.shape == (N, Cout, H, W), out.shape

    ref = _ref_forward(x, params)
    max_err = float(jnp.max(jnp.abs(out - ref)))
    # bf16 MXU operands -> looser tolerance than a pure-f32 implementation.
    assert max_err < 5e-2, f"mismatch vs reference: {max_err}"

    print("KERNEL_OK")
</pallas_src>

<mosaic_0001>
module attributes {stable_mosaic.version = 11 : i64} {
  func.func @_bn_relu_kernel(%arg0: i32, %arg1: memref<128x128xf32, #tpu.memory_space<vmem>>, %arg2: memref<1x128xf32, #tpu.memory_space<vmem>>, %arg3: memref<1x128xf32, #tpu.memory_space<vmem>>, %arg4: memref<128x128xbf16, #tpu.memory_space<vmem>>) attributes {dimension_semantics = [#tpu.dimension_semantics<parallel>], iteration_bounds = array<i64: 4>, scalar_prefetch = 0 : i64, scratch_operands = 0 : i64, tpu.core_type = #tpu.core_type<tc>, window_params = [{transform_indices = @transform_0, window_bounds = array<i64: 128, 128>}, {pipeline_mode = #tpu.pipeline_mode<synchronous>, transform_indices = @transform_1, window_bounds = array<i64: 1, 128>}, {pipeline_mode = #tpu.pipeline_mode<synchronous>, transform_indices = @transform_2, window_bounds = array<i64: 1, 128>}, {transform_indices = @transform_3, window_bounds = array<i64: 128, 128>}]} {
    %c0 = arith.constant 0 : index
    %c0_0 = arith.constant 0 : index
    %0 = vector.load %arg1[%c0, %c0_0] : memref<128x128xf32, #tpu.memory_space<vmem>>, vector<128x128xf32>
    %c0_1 = arith.constant 0 : index
    %c0_2 = arith.constant 0 : index
    %1 = vector.load %arg2[%c0_1, %c0_2] : memref<1x128xf32, #tpu.memory_space<vmem>>, vector<1x128xf32>
    %2 = vector.broadcast %1 : vector<1x128xf32> to vector<128x128xf32>
    %3 = arith.mulf %0, %2 : vector<128x128xf32>
    %c0_3 = arith.constant 0 : index
    %c0_4 = arith.constant 0 : index
    %4 = vector.load %arg3[%c0_3, %c0_4] : memref<1x128xf32, #tpu.memory_space<vmem>>, vector<1x128xf32>
    %5 = vector.broadcast %4 : vector<1x128xf32> to vector<128x128xf32>
    %6 = arith.addf %3, %5 : vector<128x128xf32>
    %cst = arith.constant 0.000000e+00 : f32
    %7 = vector.broadcast %cst : f32 to vector<128x128xf32>
    %8 = arith.maximumf %6, %7 : vector<128x128xf32>
    %9 = arith.truncf %8 : vector<128x128xf32> to vector<128x128xbf16>
    %c0_5 = arith.constant 0 : index
    %c0_6 = arith.constant 0 : index
    %10 = vector.load %arg4[%c0_5, %c0_6] : memref<128x128xbf16, #tpu.memory_space<vmem>>, vector<128x128xbf16>
    tpu.vector_store %arg4[%c0_5, %c0_6], %9 {strides = array<i32>} : memref<128x128xbf16, #tpu.memory_space<vmem>>, vector<128x128xbf16>,
    return
  }
  func.func @transform_0(%arg0: i32) -> (i32, i32) {
    %c0_i32 = arith.constant 0 : i32
    %c0_i32_0 = arith.constant 0 : i32
    return %arg0, %c0_i32 : i32, i32
  }
  func.func @transform_1(%arg0: i32) -> (i32, i32) {
    %c0_i32 = arith.constant 0 : i32
    %c0_i32_0 = arith.constant 0 : i32
    %c0_i32_1 = arith.constant 0 : i32
    return %c0_i32, %c0_i32_0 : i32, i32
  }
  func.func @transform_2(%arg0: i32) -> (i32, i32) {
    %c0_i32 = arith.constant 0 : i32
    %c0_i32_0 = arith.constant 0 : i32
    %c0_i32_1 = arith.constant 0 : i32
    return %c0_i32, %c0_i32_0 : i32, i32
  }
  func.func @transform_3(%arg0: i32) -> (i32, i32) {
    %c0_i32 = arith.constant 0 : i32
    %c0_i32_0 = arith.constant 0 : i32
    return %arg0, %c0_i32 : i32, i32
  }
}

module attributes {stable_mosaic.version = 11 : i64} {
  func.func @_conv3x3_stats_kernel(%arg0: i32, %arg1: memref<128x128xbf16, #tpu.memory_space<vmem>>, %arg2: memref<128x128xbf16, #tpu.memory_space<vmem>>, %arg3: memref<128x128xbf16, #tpu.memory_space<vmem>>, %arg4: memref<9x128x128xbf16, #tpu.memory_space<vmem>>, %arg5: memref<128x128xf32, #tpu.memory_space<vmem>>, %arg6: memref<2x128xf32, #tpu.memory_space<vmem>>) attributes {dimension_semantics = [#tpu.dimension_semantics<arbitrary>], iteration_bounds = array<i64: 4>, scalar_prefetch = 0 : i64, scratch_operands = 0 : i64, tpu.core_type = #tpu.core_type<tc>, window_params = [{transform_indices = @transform_0, window_bounds = array<i64: 128, 128>}, {transform_indices = @transform_1, window_bounds = array<i64: 128, 128>}, {transform_indices = @transform_2, window_bounds = array<i64: 128, 128>}, {pipeline_mode = #tpu.pipeline_mode<synchronous>, transform_indices = @transform_3, window_bounds = array<i64: 9, 128, 128>}, {transform_indices = @transform_4, window_bounds = array<i64: 128, 128>}, {pipeline_mode = #tpu.pipeline_mode<synchronous>, transform_indices = @transform_5, window_bounds = array<i64: 2, 128>}]} {
    %cst = arith.constant 0.000000e+00 : f32
    %0 = vector.broadcast %cst : f32 to vector<128x128xf32>
    %c0 = arith.constant 0 : index
    %c0_0 = arith.constant 0 : index
    %1 = vector.load %arg1[%c0, %c0_0] : memref<128x128xbf16, #tpu.memory_space<vmem>>, vector<128x128xbf16>
    %2 = tpu.iota {dimensions = array<i32: 0>} : vector<128x128xi32>
    %c16_i32 = arith.constant 16 : i32
    %c0_i32 = arith.constant 0 : i32
    %3 = arith.cmpi eq, %c16_i32, %c0_i32 : i32
    %c1_i32 = arith.constant 1 : i32
    %4 = arith.select %3, %c1_i32, %c16_i32 : i32
    %5 = vector.broadcast %4 : i32 to vector<128x128xi32>
    %6 = arith.remsi %2, %5 : vector<128x128xi32>
    %c0_i32_1 = arith.constant 0 : i32
    %7 = vector.broadcast %c0_i32_1 : i32 to vector<128x128xi32>
    %8 = arith.cmpi ne, %6, %7 : vector<128x128xi32>
    %c0_i32_2 = arith.constant 0 : i32
    %9 = vector.broadcast %c0_i32_2 : i32 to vector<128x128xi32>
    %10 = arith.cmpi slt, %6, %9 : vector<128x128xi32>
    %c0_i32_3 = arith.constant 0 : i32
    %11 = arith.cmpi slt, %4, %c0_i32_3 : i32
    %12 = vector.broadcast %11 : i1 to vector<128x128xi1>
    %13 = vector.broadcast %12 : vector<128x128xi1> to vector<128x128xi1>
    %14 = arith.xori %10, %13 : vector<128x128xi1>
    %15 = arith.andi %14, %8 : vector<128x128xi1>
    %16 = vector.broadcast %4 : i32 to vector<128x128xi32>
    %17 = arith.addi %6, %16 : vector<128x128xi32>
    %18 = arith.select %15, %17, %6 : vector<128x128xi1>, vector<128x128xi32>
    %cst_4 = arith.constant 0.000000e+00 : bf16
    %19 = vector.broadcast %cst_4 : bf16 to vector<128x128xbf16>
    %c0_i32_5 = arith.constant 0 : i32
    %20 = vector.broadcast %c0_i32_5 : i32 to vector<128x128xi32>
    %21 = arith.cmpi eq, %18, %20 : vector<128x128xi32>
    %22 = vector.extract_strided_slice %19 {offsets = [0, 0], sizes = [1, 128], strides = [1, 1]} : vector<128x128xbf16> to vector<1x128xbf16>
    %23 = vector.extract_strided_slice %1 {offsets = [0, 0], sizes = [127, 128], strides = [1, 1]} : vector<128x128xbf16> to vector<127x128xbf16>
    %24 = tpu.concatenate %22, %23 in 0 : vector<1x128xbf16>, vector<127x128xbf16> -> vector<128x128xbf16>
    %25 = arith.select %21, %19, %24 : vector<128x128xi1>, vector<128x128xbf16>
    %c15_i32 = arith.constant 15 : i32
    %26 = vector.broadcast %c15_i32 : i32 to vector<128x128xi32>
    %27 = arith.cmpi eq, %18, %26 : vector<128x128xi32>
    %28 = vector.extract_strided_slice %1 {offsets = [1, 0], sizes = [127, 128], strides = [1, 1]} : vector<128x128xbf16> to vector<127x128xbf16>
    %29 = vector.extract_strided_slice %19 {offsets = [0, 0], sizes = [1, 128], strides = [1, 1]} : vector<128x128xbf16> to vector<1x128xbf16>
    %30 = tpu.concatenate %28, %29 in 0 : vector<127x128xbf16>, vector<1x128xbf16> -> vector<128x128xbf16>
    %31 = arith.select %27, %19, %30 : vector<128x128xi1>, vector<128x128xbf16>
    %c0_6 = arith.constant 0 : index
    %c0_7 = arith.constant 0 : index
    %c0_8 = arith.constant 0 : index
    %32 = vector.load %arg4[%c0_6, %c0_7, %c0_8] : memref<9x128x128xbf16, #tpu.memory_space<vmem>>, vector<1x128x128xbf16>
    %33 = vector.shape_cast %32 : vector<1x128x128xbf16> to vector<128x128xbf16>
    %cst_9 = arith.constant dense<0.000000e+00> : vector<128x128xf32>
    %34 = tpu.matmul %25, %33, %cst_9 {dimension_numbers = #tpu.dot_dimension_numbers<[1], [0], [0], [1], [0, 0, 1, 1], [], []>} : vector<128x128xbf16>, vector<128x128xbf16>, vector<128x128xf32> -> vector<128x128xf32>
    %35 = arith.addf %0, %34 : vector<128x128xf32>
    %c1 = arith.constant 1 : index
    %c0_10 = arith.constant 0 : index
    %c0_11 = arith.constant 0 : index
    %36 = vector.load %arg4[%c1, %c0_10, %c0_11] : memref<9x128x128xbf16, #tpu.memory_space<vmem>>, vector<1x128x128xbf16>
    %37 = vector.shape_cast %36 : vector<1x128x128xbf16> to vector<128x128xbf16>
    %cst_12 = arith.constant dense<0.000000e+00> : vector<128x128xf32>
    %38 = tpu.matmul %1, %37, %cst_12 {dimension_numbers = #tpu.dot_dimension_numbers<[1], [0], [0], [1], [0, 0, 1, 1], [], []>} : vector<128x128xbf16>, vector<128x128xbf16>, vector<128x128xf32> -> vector<128x128xf32>
    %39 = arith.addf %35, %38 : vector<128x128xf32>
    %c2 = arith.constant 2 : index
    %c0_13 = arith.constant 0 : index
    %c0_14 = arith.constant 0 : index
    %40 = vector.load %arg4[%c2, %c0_13, %c0_14] : memref<9x128x128xbf16, #tpu.memory_space<vmem>>, vector<1x128x128xbf16>
    %41 = vector.shape_cast %40 : vector<1x128x128xbf16> to vector<128x128xbf16>
    %cst_15 = arith.constant dense<0.000000e+00> : vector<128x128xf32>
    %42 = tpu.matmul %31, %41, %cst_15 {dimension_numbers = #tpu.dot_dimension_numbers<[1], [0], [0], [1], [0, 0, 1, 1], [], []>} : vector<128x128xbf16>, vector<128x128xbf16>, vector<128x128xf32> -> vector<128x128xf32>
    %43 = arith.addf %39, %42 : vector<128x128xf32>
    %c0_16 = arith.constant 0 : index
    %c0_17 = arith.constant 0 : index
    %44 = vector.load %arg2[%c0_16, %c0_17] : memref<128x128xbf16, #tpu.memory_space<vmem>>, vector<128x128xbf16>
    %45 = tpu.iota {dimensions = array<i32: 0>} : vector<128x128xi32>
    %c16_i32_18 = arith.constant 16 : i32
    %c0_i32_19 = arith.constant 0 : i32
    %46 = arith.cmpi eq, %c16_i32_18, %c0_i32_19 : i32
    %c1_i32_20 = arith.constant 1 : i32
    %47 = arith.select %46, %c1_i32_20, %c16_i32_18 : i32
    %48 = vector.broadcast %47 : i32 to vector<128x128xi32>
    %49 = arith.remsi %45, %48 : vector<128x128xi32>
    %c0_i32_21 = arith.constant 0 : i32
    %50 = vector.broadcast %c0_i32_21 : i32 to vector<128x128xi32>
    %51 = arith.cmpi ne, %49, %50 : vector<128x128xi32>
    %c0_i32_22 = arith.constant 0 : i32
    %52 = vector.broadcast %c0_i32_22 : i32 to vector<128x128xi32>
    %53 = arith.cmpi slt, %49, %52 : vector<128x128xi32>
    %c0_i32_23 = arith.constant 0 : i32
    %54 = arith.cmpi slt, %47, %c0_i32_23 : i32
    %55 = vector.broadcast %54 : i1 to vector<128x128xi1>
    %56 = vector.broadcast %55 : vector<128x128xi1> to vector<128x128xi1>
    %57 = arith.xori %53, %56 : vector<128x128xi1>
    %58 = arith.andi %57, %51 : vector<128x128xi1>
    %59 = vector.broadcast %47 : i32 to vector<128x128xi32>
    %60 = arith.addi %49, %59 : vector<128x128xi32>
    %61 = arith.select %58, %60, %49 : vector<128x128xi1>, vector<128x128xi32>
    %cst_24 = arith.constant 0.000000e+00 : bf16
    %62 = vector.broadcast %cst_24 : bf16 to vector<128x128xbf16>
    %c0_i32_25 = arith.constant 0 : i32
    %63 = vector.broadcast %c0_i32_25 : i32 to vector<128x128xi32>
    %64 = arith.cmpi eq, %61, %63 : vector<128x128xi32>
    %65 = vector.extract_strided_slice %62 {offsets = [0, 0], sizes = [1, 128], strides = [1, 1]} : vector<128x128xbf16> to vector<1x128xbf16>
    %66 = vector.extract_strided_slice %44 {offsets = [0, 0], sizes = [127, 128], strides = [1, 1]} : vector<128x128xbf16> to vector<127x128xbf16>
    %67 = tpu.concatenate %65, %66 in 0 : vector<1x128xbf16>, vector<127x128xbf16> -> vector<128x128xbf16>
    %68 = arith.select %64, %62, %67 : vector<128x128xi1>, vector<128x128xbf16>
    %c15_i32_26 = arith.constant 15 : i32
    %69 = vector.broadcast %c15_i32_26 : i32 to vector<128x128xi32>
    %70 = arith.cmpi eq, %61, %69 : vector<128x128xi32>
    %71 = vector.extract_strided_slice %44 {offsets = [1, 0], sizes = [127, 128], strides = [1, 1]} : vector<128x128xbf16> to vector<127x128xbf16>
    %72 = vector.extract_strided_slice %62 {offsets = [0, 0], sizes = [1, 128], strides = [1, 1]} : vector<128x128xbf16> to vector<1x128xbf16>
    %73 = tpu.concatenate %71, %72 in 0 : vector<127x128xbf16>, vector<1x128xbf16> -> vector<128x128xbf16>
    %74 = arith.select %70, %62, %73 : vector<128x128xi1>, vector<128x128xbf16>
    %c3 = arith.constant 3 : index
    %c0_27 = arith.constant 0 : index
    %c0_28 = arith.constant 0 : index
    %75 = vector.load %arg4[%c3, %c0_27, %c0_28] : memref<9x128x128xbf16, #tpu.memory_space<vmem>>, vector<1x128x128xbf16>
    %76 = vector.shape_cast %75 : vector<1x128x128xbf16> to vector<128x128xbf16>
    %cst_29 = arith.constant dense<0.000000e+00> : vector<128x128xf32>
    %77 = tpu.matmul %68, %76, %cst_29 {dimension_numbers = #tpu.dot_dimension_numbers<[1], [0], [0], [1], [0, 0, 1, 1], [], []>} : vector<128x128xbf16>, vector<128x128xbf16>, vector<128x128xf32> -> vector<128x128xf32>
    %78 = arith.addf %43, %77 : vector<128x128xf32>
    %c4 = arith.constant 4 : index
    %c0_30 = arith.constant 0 : index
    %c0_31 = arith.constant 0 : index
    %79 = vector.load %arg4[%c4, %c0_30, %c0_31] : memref<9x128x128xbf16, #tpu.memory_space<vmem>>, vector<1x128x128xbf16>
    %80 = vector.shape_cast %79 : vector<1x128x128xbf16> to vector<128x128xbf16>
    %cst_32 = arith.constant dense<0.000000e+00> : vector<128x128xf32>
    %81 = tpu.matmul %44, %80, %cst_32 {dimension_numbers = #tpu.dot_dimension_numbers<[1], [0], [0], [1], [0, 0, 1, 1], [], []>} : vector<128x128xbf16>, vector<128x128xbf16>, vector<128x128xf32> -> vector<128x128xf32>
    %82 = arith.addf %78, %81 : vector<128x128xf32>
    %c5 = arith.constant 5 : index
    %c0_33 = arith.constant 0 : index
    %c0_34 = arith.constant 0 : index
    %83 = vector.load %arg4[%c5, %c0_33, %c0_34] : memref<9x128x128xbf16, #tpu.memory_space<vmem>>, vector<1x128x128xbf16>
    %84 = vector.shape_cast %83 : vector<1x128x128xbf16> to vector<128x128xbf16>
    %cst_35 = arith.constant dense<0.000000e+00> : vector<128x128xf32>
    %85 = tpu.matmul %74, %84, %cst_35 {dimension_numbers = #tpu.dot_dimension_numbers<[1], [0], [0], [1], [0, 0, 1, 1], [], []>} : vector<128x128xbf16>, vector<128x128xbf16>, vector<128x128xf32> -> vector<128x128xf32>
    %86 = arith.addf %82, %85 : vector<128x128xf32>
    %c0_36 = arith.constant 0 : index
    %c0_37 = arith.constant 0 : index
    %87 = vector.load %arg3[%c0_36, %c0_37] : memref<128x128xbf16, #tpu.memory_space<vmem>>, vector<128x128xbf16>
    %88 = tpu.iota {dimensions = array<i32: 0>} : vector<128x128xi32>
    %c16_i32_38 = arith.constant 16 : i32
    %c0_i32_39 = arith.constant 0 : i32
    %89 = arith.cmpi eq, %c16_i32_38, %c0_i32_39 : i32
    %c1_i32_40 = arith.constant 1 : i32
    %90 = arith.select %89, %c1_i32_40, %c16_i32_38 : i32
    %91 = vector.broadcast %90 : i32 to vector<128x128xi32>
    %92 = arith.remsi %88, %91 : vector<128x128xi32>
    %c0_i32_41 = arith.constant 0 : i32
    %93 = vector.broadcast %c0_i32_41 : i32 to vector<128x128xi32>
    %94 = arith.cmpi ne, %92, %93 : vector<128x128xi32>
    %c0_i32_42 = arith.constant 0 : i32
    %95 = vector.broadcast %c0_i32_42 : i32 to vector<128x128xi32>
    %96 = arith.cmpi slt, %92, %95 : vector<128x128xi32>
    %c0_i32_43 = arith.constant 0 : i32
    %97 = arith.cmpi slt, %90, %c0_i32_43 : i32
    %98 = vector.broadcast %97 : i1 to vector<128x128xi1>
    %99 = vector.broadcast %98 : vector<128x128xi1> to vector<128x128xi1>
    %100 = arith.xori %96, %99 : vector<128x128xi1>
    %101 = arith.andi %100, %94 : vector<128x128xi1>
    %102 = vector.broadcast %90 : i32 to vector<128x128xi32>
    %103 = arith.addi %92, %102 : vector<128x128xi32>
    %104 = arith.select %101, %103, %92 : vector<128x128xi1>, vector<128x128xi32>
    %cst_44 = arith.constant 0.000000e+00 : bf16
    %105 = vector.broadcast %cst_44 : bf16 to vector<128x128xbf16>
    %c0_i32_45 = arith.constant 0 : i32
    %106 = vector.broadcast %c0_i32_45 : i32 to vector<128x128xi32>
    %107 = arith.cmpi eq, %104, %106 : vector<128x128xi32>
    %108 = vector.extract_strided_slice %105 {offsets = [0, 0], sizes = [1, 128], strides = [1, 1]} : vector<128x128xbf16> to vector<1x128xbf16>
    %109 = vector.extract_strided_slice %87 {offsets = [0, 0], sizes = [127, 128], strides = [1, 1]} : vector<128x128xbf16> to vector<127x128xbf16>
    %110 = tpu.concatenate %108, %109 in 0 : vector<1x128xbf16>, vector<127x128xbf16> -> vector<128x128xbf16>
    %111 = arith.select %107, %105, %110 : vector<128x128xi1>, vector<128x128xbf16>
    %c15_i32_46 = arith.constant 15 : i32
    %112 = vector.broadcast %c15_i32_46 : i32 to vector<128x128xi32>
    %113 = arith.cmpi eq, %104, %112 : vector<128x128xi32>
    %114 = vector.extract_strided_slice %87 {offsets = [1, 0], sizes = [127, 128], strides = [1, 1]} : vector<128x128xbf16> to vector<127x128xbf16>
    %115 = vector.extract_strided_slice %105 {offsets = [0, 0], sizes = [1, 128], strides = [1, 1]} : vector<128x128xbf16> to vector<1x128xbf16>
    %116 = tpu.concatenate %114, %115 in 0 : vector<127x128xbf16>, vector<1x128xbf16> -> vector<128x128xbf16>
    %117 = arith.select %113, %105, %116 : vector<128x128xi1>, vector<128x128xbf16>
    %c6 = arith.constant 6 : index
    %c0_47 = arith.constant 0 : index
    %c0_48 = arith.constant 0 : index
    %118 = vector.load %arg4[%c6, %c0_47, %c0_48] : memref<9x128x128xbf16, #tpu.memory_space<vmem>>, vector<1x128x128xbf16>
    %119 = vector.shape_cast %118 : vector<1x128x128xbf16> to vector<128x128xbf16>
    %cst_49 = arith.constant dense<0.000000e+00> : vector<128x128xf32>
    %120 = tpu.matmul %111, %119, %cst_49 {dimension_numbers = #tpu.dot_dimension_numbers<[1], [0], [0], [1], [0, 0, 1, 1], [], []>} : vector<128x128xbf16>, vector<128x128xbf16>, vector<128x128xf32> -> vector<128x128xf32>
    %121 = arith.addf %86, %120 : vector<128x128xf32>
    %c7 = arith.constant 7 : index
    %c0_50 = arith.constant 0 : index
    %c0_51 = arith.constant 0 : index
    %122 = vector.load %arg4[%c7, %c0_50, %c0_51] : memref<9x128x128xbf16, #tpu.memory_space<vmem>>, vector<1x128x128xbf16>
    %123 = vector.shape_cast %122 : vector<1x128x128xbf16> to vector<128x128xbf16>
    %cst_52 = arith.constant dense<0.000000e+00> : vector<128x128xf32>
    %124 = tpu.matmul %87, %123, %cst_52 {dimension_numbers = #tpu.dot_dimension_numbers<[1], [0], [0], [1], [0, 0, 1, 1], [], []>} : vector<128x128xbf16>, vector<128x128xbf16>, vector<128x128xf32> -> vector<128x128xf32>
    %125 = arith.addf %121, %124 : vector<128x128xf32>
    %c8 = arith.constant 8 : index
    %c0_53 = arith.constant 0 : index
    %c0_54 = arith.constant 0 : index
    %126 = vector.load %arg4[%c8, %c0_53, %c0_54] : memref<9x128x128xbf16, #tpu.memory_space<vmem>>, vector<1x128x128xbf16>
    %127 = vector.shape_cast %126 : vector<1x128x128xbf16> to vector<128x128xbf16>
    %cst_55 = arith.constant dense<0.000000e+00> : vector<128x128xf32>
    %128 = tpu.matmul %117, %127, %cst_55 {dimension_numbers = #tpu.dot_dimension_numbers<[1], [0], [0], [1], [0, 0, 1, 1], [], []>} : vector<128x128xbf16>, vector<128x128xbf16>, vector<128x128xf32> -> vector<128x128xf32>
    %129 = arith.addf %125, %128 : vector<128x128xf32>
    %c0_56 = arith.constant 0 : index
    %c0_57 = arith.constant 0 : index
    %130 = vector.load %arg5[%c0_56, %c0_57] : memref<128x128xf32, #tpu.memory_space<vmem>>, vector<128x128xf32>
    tpu.vector_store %arg5[%c0_56, %c0_57], %129 {strides = array<i32>} : memref<128x128xf32, #tpu.memory_space<vmem>>, vector<128x128xf32>,
    %c0_i32_58 = arith.constant 0 : i32
    %131 = arith.cmpi eq, %arg0, %c0_i32_58 : i32
    %132 = arith.extui %131 : i1 to i32
    %c0_i32_59 = arith.constant 0 : i32
    %133 = arith.cmpi ne, %132, %c0_i32_59 : i32
    scf.if %133 {
      %cst_66 = arith.constant 0.000000e+00 : f32
      %143 = vector.broadcast %cst_66 : f32 to vector<2x128xf32>
      %c0_67 = arith.constant 0 : index
      %c0_68 = arith.constant 0 : index
      %144 = vector.load %arg6[%c0_67, %c0_68] : memref<2x128xf32, #tpu.memory_space<vmem>>, vector<2x128xf32>
      tpu.vector_store %arg6[%c0_67, %c0_68], %143 {strides = array<i32>} : memref<2x128xf32, #tpu.memory_space<vmem>>, vector<2x128xf32>,
    } else {
    }
    %cst_60 = arith.constant dense<0.000000e+00> : vector<128xf32>
    %134 = vector.multi_reduction <add>, %129, %cst_60 [0] : vector<128x128xf32> to vector<128xf32>
    %135 = vector.shape_cast %134 : vector<128xf32> to vector<1x128xf32>
    %136 = arith.mulf %129, %129 : vector<128x128xf32>
    %cst_61 = arith.constant dense<0.000000e+00> : vector<128xf32>
    %137 = vector.multi_reduction <add>, %136, %cst_61 [0] : vector<128x128xf32> to vector<128xf32>
    %138 = vector.shape_cast %137 : vector<128xf32> to vector<1x128xf32>
    %c0_62 = arith.constant 0 : index
    %c0_63 = arith.constant 0 : index
    %139 = vector.load %arg6[%c0_62, %c0_63] : memref<2x128xf32, #tpu.memory_space<vmem>>, vector<2x128xf32>
    %140 = tpu.concatenate %135, %138 in 0 : vector<1x128xf32>, vector<1x128xf32> -> vector<2x128xf32>
    %141 = arith.addf %139, %140 : vector<2x128xf32>
    %c0_64 = arith.constant 0 : index
    %c0_65 = arith.constant 0 : index
    %142 = vector.load %arg6[%c0_64, %c0_65] : memref<2x128xf32, #tpu.memory_space<vmem>>, vector<2x128xf32>
    tpu.vector_store %arg6[%c0_64, %c0_65], %141 {strides = array<i32>} : memref<2x128xf32, #tpu.memory_space<vmem>>, vector<2x128xf32>,
    return
  }
  func.func @transform_0(%arg0: i32) -> (i32, i32) {
    %c0_i32 = arith.constant 0 : i32
    %c0_i32_0 = arith.constant 0 : i32
    return %arg0, %c0_i32 : i32, i32
  }
  func.func @transform_1(%arg0: i32) -> (i32, i32) {
    %c0_i32 = arith.constant 0 : i32
    %c0_i32_0 = arith.constant 0 : i32
    return %arg0, %c0_i32 : i32, i32
  }
  func.func @transform_2(%arg0: i32) -> (i32, i32) {
    %c0_i32 = arith.constant 0 : i32
    %c0_i32_0 = arith.constant 0 : i32
    return %arg0, %c0_i32 : i32, i32
  }
  func.func @transform_3(%arg0: i32) -> (i32, i32, i32) {
    %c0_i32 = arith.constant 0 : i32
    %c0_i32_0 = arith.constant 0 : i32
    %c0_i32_1 = arith.constant 0 : i32
    %c0_i32_2 = arith.constant 0 : i32
    return %c0_i32, %c0_i32_0, %c0_i32_1 : i32, i32, i32
  }
  func.func @transform_4(%arg0: i32) -> (i32, i32) {
    %c0_i32 = arith.constant 0 : i32
    %c0_i32_0 = arith.constant 0 : i32
    return %arg0, %c0_i32 : i32, i32
  }
  func.func @transform_5(%arg0: i32) -> (i32, i32) {
    %c0_i32 = arith.constant 0 : i32
    %c0_i32_0 = arith.constant 0 : i32
    %c0_i32_1 = arith.constant 0 : i32
    return %c0_i32, %c0_i32_0 : i32, i32
  }
}

module attributes {stable_mosaic.version = 11 : i64} {
  func.func @_bn_relu_residual_kernel(%arg0: i32, %arg1: memref<128x128xf32, #tpu.memory_space<vmem>>, %arg2: memref<128x128xbf16, #tpu.memory_space<vmem>>, %arg3: memref<128x128xbf16, #tpu.memory_space<vmem>>, %arg4: memref<1x128xf32, #tpu.memory_space<vmem>>, %arg5: memref<1x128xf32, #tpu.memory_space<vmem>>, %arg6: memref<1x128xf32, #tpu.memory_space<vmem>>, %arg7: memref<128x128xf32, #tpu.memory_space<vmem>>) attributes {dimension_semantics = [#tpu.dimension_semantics<parallel>], iteration_bounds = array<i64: 4>, scalar_prefetch = 0 : i64, scratch_operands = 0 : i64, tpu.core_type = #tpu.core_type<tc>, window_params = [{transform_indices = @transform_0, window_bounds = array<i64: 128, 128>}, {transform_indices = @transform_1, window_bounds = array<i64: 128, 128>}, {pipeline_mode = #tpu.pipeline_mode<synchronous>, transform_indices = @transform_2, window_bounds = array<i64: 128, 128>}, {pipeline_mode = #tpu.pipeline_mode<synchronous>, transform_indices = @transform_3, window_bounds = array<i64: 1, 128>}, {pipeline_mode = #tpu.pipeline_mode<synchronous>, transform_indices = @transform_4, window_bounds = array<i64: 1, 128>}, {pipeline_mode = #tpu.pipeline_mode<synchronous>, transform_indices = @transform_5, window_bounds = array<i64: 1, 128>}, {transform_indices = @transform_6, window_bounds = array<i64: 128, 128>}]} {
    %c0 = arith.constant 0 : index
    %c0_0 = arith.constant 0 : index
    %0 = vector.load %arg1[%c0, %c0_0] : memref<128x128xf32, #tpu.memory_space<vmem>>, vector<128x128xf32>
    %c0_1 = arith.constant 0 : index
    %c0_2 = arith.constant 0 : index
    %1 = vector.load %arg4[%c0_1, %c0_2] : memref<1x128xf32, #tpu.memory_space<vmem>>, vector<1x128xf32>
    %2 = vector.broadcast %1 : vector<1x128xf32> to vector<128x128xf32>
    %3 = arith.mulf %0, %2 : vector<128x128xf32>
    %c0_3 = arith.constant 0 : index
    %c0_4 = arith.constant 0 : index
    %4 = vector.load %arg5[%c0_3, %c0_4] : memref<1x128xf32, #tpu.memory_space<vmem>>, vector<1x128xf32>
    %5 = vector.broadcast %4 : vector<1x128xf32> to vector<128x128xf32>
    %6 = arith.addf %3, %5 : vector<128x128xf32>
    %cst = arith.constant 0.000000e+00 : f32
    %7 = vector.broadcast %cst : f32 to vector<128x128xf32>
    %8 = arith.maximumf %6, %7 : vector<128x128xf32>
    %c0_5 = arith.constant 0 : index
    %c0_6 = arith.constant 0 : index
    %9 = vector.load %arg2[%c0_5, %c0_6] : memref<128x128xbf16, #tpu.memory_space<vmem>>, vector<128x128xbf16>
    %c0_7 = arith.constant 0 : index
    %c0_8 = arith.constant 0 : index
    %10 = vector.load %arg3[%c0_7, %c0_8] : memref<128x128xbf16, #tpu.memory_space<vmem>>, vector<128x128xbf16>
    %cst_9 = arith.constant dense<0.000000e+00> : vector<128x128xf32>
    %11 = tpu.matmul %9, %10, %cst_9 {dimension_numbers = #tpu.dot_dimension_numbers<[1], [0], [0], [1], [0, 0, 1, 1], [], []>} : vector<128x128xbf16>, vector<128x128xbf16>, vector<128x128xf32> -> vector<128x128xf32>
    %c0_10 = arith.constant 0 : index
    %c0_11 = arith.constant 0 : index
    %12 = vector.load %arg6[%c0_10, %c0_11] : memref<1x128xf32, #tpu.memory_space<vmem>>, vector<1x128xf32>
    %13 = vector.broadcast %12 : vector<1x128xf32> to vector<128x128xf32>
    %14 = arith.addf %11, %13 : vector<128x128xf32>
    %15 = arith.addf %8, %14 : vector<128x128xf32>
    %cst_12 = arith.constant 0.000000e+00 : f32
    %16 = vector.broadcast %cst_12 : f32 to vector<128x128xf32>
    %17 = arith.maximumf %15, %16 : vector<128x128xf32>
    %c0_13 = arith.constant 0 : index
    %c0_14 = arith.constant 0 : index
    %18 = vector.load %arg7[%c0_13, %c0_14] : memref<128x128xf32, #tpu.memory_space<vmem>>, vector<128x128xf32>
    tpu.vector_store %arg7[%c0_13, %c0_14], %17 {strides = array<i32>} : memref<128x128xf32, #tpu.memory_space<vmem>>, vector<128x128xf32>,
    return
  }
  func.func @transform_0(%arg0: i32) -> (i32, i32) {
    %c0_i32 = arith.constant 0 : i32
    %c0_i32_0 = arith.constant 0 : i32
    return %arg0, %c0_i32 : i32, i32
  }
  func.func @transform_1(%arg0: i32) -> (i32, i32) {
    %c0_i32 = arith.constant 0 : i32
    %c0_i32_0 = arith.constant 0 : i32
    return %arg0, %c0_i32 : i32, i32
  }
  func.func @transform_2(%arg0: i32) -> (i32, i32) {
    %c0_i32 = arith.constant 0 : i32
    %c0_i32_0 = arith.constant 0 : i32
    %c0_i32_1 = arith.constant 0 : i32
    return %c0_i32, %c0_i32_0 : i32, i32
  }
  func.func @transform_3(%arg0: i32) -> (i32, i32) {
    %c0_i32 = arith.constant 0 : i32
    %c0_i32_0 = arith.constant 0 : i32
    %c0_i32_1 = arith.constant 0 : i32
    return %c0_i32, %c0_i32_0 : i32, i32
  }
  func.func @transform_4(%arg0: i32) -> (i32, i32) {
    %c0_i32 = arith.constant 0 : i32
    %c0_i32_0 = arith.constant 0 : i32
    %c0_i32_1 = arith.constant 0 : i32
    return %c0_i32, %c0_i32_0 : i32, i32
  }
  func.func @transform_5(%arg0: i32) -> (i32, i32) {
    %c0_i32 = arith.constant 0 : i32
    %c0_i32_0 = arith.constant 0 : i32
    %c0_i32_1 = arith.constant 0 : i32
    return %c0_i32, %c0_i32_0 : i32, i32
  }
  func.func @transform_6(%arg0: i32) -> (i32, i32) {
    %c0_i32 = arith.constant 0 : i32
    %c0_i32_0 = arith.constant 0 : i32
    return %arg0, %c0_i32 : i32, i32
  }
}

</mosaic_0001>

<bundles_post_ra>
// kernel: resblock_forward.5
= control target key start
LH: loop header
LB: loop body
LE: loop exit
PB: predicated region body
PF: predicated region fallthrough
CT: control target
= control target key end

     0   :  { %s430_s12 = smov 0   ;;  %s521_s0 = inlined_call_operand.vmem [shape: f32[512,128], index: 0, kind: input, shape index: {}]   ;;  %s522_s1 = inlined_call_operand.vmem [shape: f32[1,128], index: 1, kind: input, shape index: {}]   ;;  %s523_s2 = inlined_call_operand.vmem [shape: f32[1,128], index: 2, kind: input, shape index: {}]   ;;  %s524_s3 = inlined_call_operand.vmem [shape: bf16[512,128], index: 3, kind: output, shape index: {}]  }
   0x1 LB: > { %s334_s13 = sadd.s32 4294967295, %s408_s12   ;;  %p338_p0 = scmp.ge.s32.totalorder %s408_s12, 1  ;;  %s408_s12 = sphi %s430_s12, %s13_s12  }
   0x2   : > { %p138_p1 = scmp.lt.s32.totalorder %s408_s12, 5 }
   0x4   : > { %p139_p2 = pnand %p338_p0, %p138_p1 }
   0x5   : > { %s339_s14 = sshll.u32 (!%p139_p2), %s334_s13, 4 }
   0x6   : > { %142 = sbr.rel (%p139_p2) target bundleno = 35 (0x23), region = 32  ;;  %p163_p3 = scmp.lt.s32.totalorder (!%p139_p2), %s339_s14, 63 }
   0xb   : > { %s526_s14 = smov (!%p163_p3, %s339_s14), 63  ;;  %v443_v0 = vld [vmem:[%s522_s1] ss:$0 sm:$0xff] }
   0xc   : > { %s340_s17 = sshll.u32 %s526_s14, 3  ;;  %v454_v1 = vld [vmem:[%s523_s2] ss:$0 sm:$0xff]  ;;  %s342_s23 = sshll.u32 %s526_s14, 2 }
   0xd   : > { %s449_s20 = scalar_lea.vmem %s521_s0, %s340_s17  ;;  %s486_s26 = scalar_lea.vmem %s524_s3, %s342_s23 }
   0xe   : > { %v174_v2 = vld [vmem:[%s449_s20] sm:$0xff]  ;;  %v175_v3 = vld [vmem:[%s449_s20 + $0x8] sm:$0xff]  ;;  %v176_v4 = vld [vmem:[%s449_s20 + $0x10] sm:$0xff] }
   0xf   : > { %v194_v5 = vmul.f32 %v443_v0, %v174_v2  ;;  %v195_v6 = vmul.f32 %v443_v0, %v175_v3  ;;  %v177_v7 = vld [vmem:[%s449_s20 + $0x18] sm:$0xff]  ;;  %v196_v8 = vmul.f32 %v443_v0, %v176_v4  ;;  %v178_v9 = vld [vmem:[%s449_s20 + $0x20] sm:$0xff]  ;;  %v179_v10 = vld [vmem:[%s449_s20 + $0x28] sm:$0xff] }
  0x10   : > { %v197_v11 = vmul.f32 %v443_v0, %v177_v7  ;;  %v198_v12 = vmul.f32 %v443_v0, %v178_v9  ;;  %v199_v13 = vmul.f32 %v443_v0, %v179_v10  ;;  %v180_v14 = vld [vmem:[%s449_s20 + $0x30] sm:$0xff]  ;;  %v181_v15 = vld [vmem:[%s449_s20 + $0x38] sm:$0xff]  ;;  %v182_v24 = vld [vmem:[%s449_s20 + $0x40] sm:$0xff] }
  0x11   : > { %v214_v16 = vadd.f32 %v454_v1, %v194_v5  ;;  %v215_v17 = vadd.f32 %v454_v1, %v195_v6  ;;  %v216_v18 = vadd.f32 %v454_v1, %v196_v8  ;;  %v200_v19 = vmul.f32 %v443_v0, %v180_v14  ;;  %v183_v25 = vld [vmem:[%s449_s20 + $0x48] sm:$0xff]  ;;  %v184_v30 = vld [vmem:[%s449_s20 + $0x50] sm:$0xff]  ;;  %v185_v35 = vld [vmem:[%s449_s20 + $0x58] sm:$0xff] }
  0x12   : > { %v217_v20 = vadd.f32 %v454_v1, %v197_v11  ;;  %v218_v21 = vadd.f32 %v454_v1, %v198_v12  ;;  %v219_v22 = vadd.f32 %v454_v1, %v199_v13  ;;  %v201_v23 = vmul.f32 %v443_v0, %v181_v15  ;;  %v186_v36 = vld [vmem:[%s449_s20 + $0x60] sm:$0xff]  ;;  %v187_v41 = vld [vmem:[%s449_s20 + $0x68] sm:$0xff]  ;;  %v188_v42 = vld [vmem:[%s449_s20 + $0x70] sm:$0xff] }
  0x13   : > { %v230_v26 = vmax.f32 %v214_v16, 0.0  ;;  %v231_v27 = vmax.f32 %v215_v17, 0.0  ;;  %v232_v28 = vmax.f32 %v216_v18, 0.0  ;;  %v220_v29 = vadd.f32 %v454_v1, %v200_v19  ;;  %v189_v51 = vld [vmem:[%s449_s20 + $0x78] sm:$0xff] }
  0x14   : > { %v233_v31 = vmax.f32 %v217_v20, 0.0  ;;  %v234_v32 = vmax.f32 %v218_v21, 0.0  ;;  %v235_v33 = vmax.f32 %v219_v22, 0.0  ;;  %v221_v34 = vadd.f32 %v454_v1, %v201_v23 }
  0x15   : > { %v348_v37 = vpack.c.bf16 %v231_v27, %v230_v26  ;;  %v236_v38 = vmax.f32 %v220_v29, 0.0  ;;  %v202_v39 = vmul.f32 %v443_v0, %v182_v24  ;;  %v203_v40 = vmul.f32 %v443_v0, %v183_v25 }
  0x16   : > { %v353_v43 = vpack.c.bf16 %v233_v31, %v232_v28  ;;  %v358_v44 = vpack.c.bf16 %v235_v33, %v234_v32  ;;  %v237_v45 = vmax.f32 %v221_v34, 0.0  ;;  %v204_v46 = vmul.f32 %v443_v0, %v184_v30 }
  0x17   : > { %349 = vst [vmem:[%s486_s26] sm:$0xff] %v348_v37   ;;  %v222_v47 = vadd.f32 %v454_v1, %v202_v39  ;;  %v223_v48 = vadd.f32 %v454_v1, %v203_v40  ;;  %v205_v49 = vmul.f32 %v443_v0, %v185_v35  ;;  %v206_v50 = vmul.f32 %v443_v0, %v186_v36 }
  0x18   : > { %385 = vst [vmem:[%s486_s26 + $0x8] sm:$0xff] %v353_v43   ;;  %v363_v52 = vpack.c.bf16 %v237_v45, %v236_v38  ;;  %v224_v53 = vadd.f32 %v454_v1, %v204_v46  ;;  %v207_v54 = vmul.f32 %v443_v0, %v187_v41  ;;  %v208_v55 = vmul.f32 %v443_v0, %v188_v42 }
  0x19   : > { %386 = vst [vmem:[%s486_s26 + $0x10] sm:$0xff] %v358_v44   ;;  %v238_v56 = vmax.f32 %v222_v47, 0.0  ;;  %v239_v57 = vmax.f32 %v223_v48, 0.0  ;;  %v225_v58 = vadd.f32 %v454_v1, %v205_v49  ;;  %v226_v59 = vadd.f32 %v454_v1, %v206_v50 }
  0x1a   : > { %387 = vst [vmem:[%s486_s26 + $0x18] sm:$0xff] %v363_v52   ;;  %v240_v60 = vmax.f32 %v224_v53, 0.0  ;;  %v227_v61 = vadd.f32 %v454_v1, %v207_v54  ;;  %v209_v62 = vmul.f32 %v443_v0, %v189_v51  ;;  %v228_v63 = vadd.f32 %v454_v1, %v208_v55 }
  0x1b   : > { %v368_v2 = vpack.c.bf16 %v239_v57, %v238_v56  ;;  %v241_v3 = vmax.f32 %v225_v58, 0.0  ;;  %v242_v4 = vmax.f32 %v226_v59, 0.0 }
  0x1c   : > { %v243_v5 = vmax.f32 %v227_v61, 0.0  ;;  %v229_v6 = vadd.f32 %v454_v1, %v209_v62  ;;  %v244_v7 = vmax.f32 %v228_v63, 0.0 }
  0x1d   : > { %388 = vst [vmem:[%s486_s26 + $0x20] sm:$0xff] %v368_v2   ;;  %v373_v8 = vpack.c.bf16 %v241_v3, %v240_v60 }
  0x1e   : > { %v378_v9 = vpack.c.bf16 %v243_v5, %v242_v4  ;;  %v245_v10 = vmax.f32 %v229_v6, 0.0 }
  0x1f   : > { %389 = vst [vmem:[%s486_s26 + $0x28] sm:$0xff] %v373_v8  }
  0x20   : > { %390 = vst [vmem:[%s486_s26 + $0x30] sm:$0xff] %v378_v9   ;;  %v383_v11 = vpack.c.bf16 %v245_v10, %v244_v7 }
  0x22   : > { %391 = vst [vmem:[%s486_s26 + $0x38] sm:$0xff] %v383_v11  }
  0x23 PF: > { %s13_s12 = sadd.s32 1, %s408_s12  }
  0x24   : > { %p10_p4 = scmp.ge.s32.totalorder %s13_s12, 6  }
  0x26   :  { %12 = sbr.rel (!%p10_p4) target bundleno = 1 (0x1), region = 62 }

// kernel: resblock_forward.7
= control target key start
LH: loop header
LB: loop body
LE: loop exit
PB: predicated region body
PF: predicated region fallthrough
CT: control target
= control target key end

     0   :  { %s817_s21 = smov 0   ;;  %s968_s0 = inlined_call_operand.vmem [shape: f32[512,128], index: 0, kind: input, shape index: {}]   ;;  %s969_s1 = inlined_call_operand.vmem [shape: bf16[512,128], index: 1, kind: input, shape index: {}]   ;;  %s970_s2 = inlined_call_operand.vmem [shape: bf16[128,128], index: 2, kind: input, shape index: {}]   ;;  %s971_s3 = inlined_call_operand.vmem [shape: f32[1,128], index: 3, kind: input, shape index: {}]   ;;  %s972_s4 = inlined_call_operand.vmem [shape: f32[1,128], index: 4, kind: input, shape index: {}]   ;;  %s973_s5 = inlined_call_operand.vmem [shape: f32[1,128], index: 5, kind: input, shape index: {}]   ;;  %s974_s6 = inlined_call_operand.vmem [shape: f32[512,128], index: 6, kind: output, shape index: {}]  }
   0x1 LB: > { %s646_s22 = sadd.s32 4294967295, %s780_s21   ;;  %p650_p0 = scmp.ge.s32.totalorder %s780_s21, 1  ;;  %s780_s21 = sphi %s817_s21, %s16_s21  }
   0x2   : > { %p224_p1 = scmp.lt.s32.totalorder %s780_s21, 5 }
   0x4   : > { %p225_p2 = pnand %p650_p0, %p224_p1 }
   0x5   : > { %s651_s7 = sshll.u32 (!%p225_p2), %s646_s22, 4 }
   0x6   : > { %228 = sbr.rel (%p225_p2) target bundleno = 208 (0xd0), region = 44  ;;  %p260_p3 = scmp.lt.s32.totalorder (!%p225_p2), %s651_s7, 63 }
   0xb   : > { %v738_v0 = vld [vmem:[%s970_s2 + $0x38] sm:$0xff]  ;;  %v737_v1 = vld [vmem:[%s970_s2 + $0x30] sm:$0xff]  ;;  %v736_v2 = vld [vmem:[%s970_s2 + $0x28] sm:$0xff]  ;;  %s976_s7 = smov (!%p260_p3, %s651_s7), 63 }
   0xc   : > { %481 = vmatpush.bf16.msra.mxu0 %v738_v0  ;;  %739 = vmatpush.bf16.msra.mxu1 %v738_v0  ;;  %v735_v3 = vld [vmem:[%s970_s2 + $0x20] sm:$0xff]  ;;  %v734_v4 = vld [vmem:[%s970_s2 + $0x18] sm:$0xff]  ;;  %v733_v5 = vld [vmem:[%s970_s2 + $0x10] sm:$0xff]  ;;  %s654_s14 = sshll.u32 %s976_s7, 2  ;;  %s652_s20 = sshll.u32 %s976_s7, 3 }
   0xd   : > { %740 = vmatpush.bf16.msra.mxu2 %v738_v0  ;;  %741 = vmatpush.bf16.msra.mxu3 %v738_v0  ;;  %v732_v6 = vld [vmem:[%s970_s2 + $0x8] sm:$0xff]  ;;  %v731_v7 = vld [vmem:[%s970_s2] sm:$0xff]  ;;  %s269_s19 = scalar_lea.vmem %s969_s1, %s654_s14  ;;  %s861_s24 = scalar_lea.vmem %s968_s0, %s652_s20 }
   0xe   : > { %v723_v8 = vld [vmem:[%s269_s19] sm:$0xff]  ;;  %v725_v9 = vld [vmem:[%s269_s19 + $0x10] sm:$0xff]  ;;  %v724_v12 = vld [vmem:[%s269_s19 + $0x8] sm:$0xff]  ;;  %s905_s10 = scalar_lea.vmem %s974_s6, %s652_s20 }
   0xf   : > { %v727_v10 = vld [vmem:[%s269_s19 + $0x20] sm:$0xff]  ;;  %v729_v11 = vld [vmem:[%s269_s19 + $0x30] sm:$0xff]  ;;  %v726_v13 = vld [vmem:[%s269_s19 + $0x18] sm:$0xff] }
  0x10   : > { %482 = vmatpush.bf16.msra.mxu0 %v737_v1  ;;  %742 = vmatpush.bf16.msra.mxu1 %v737_v1  ;;  %v728_v14 = vld [vmem:[%s269_s19 + $0x28] sm:$0xff]  ;;  %v730_v15 = vld [vmem:[%s269_s19 + $0x38] sm:$0xff]  ;;  %v866_v16 = vld [vmem:[%s971_s3] ss:$0 sm:$0xff] }
  0x11   : > { %743 = vmatpush.bf16.msra.mxu2 %v737_v1  ;;  %744 = vmatpush.bf16.msra.mxu3 %v737_v1  ;;  %v277_v17 = vld [vmem:[%s861_s24] sm:$0xff]  ;;  %v278_v26 = vld [vmem:[%s861_s24 + $0x8] sm:$0xff]  ;;  %v279_v47 = vld [vmem:[%s861_s24 + $0x10] sm:$0xff] }
  0x12   : > { %v281_v18 = vld [vmem:[%s861_s24 + $0x20] sm:$0xff]  ;;  %v297_v19 = vmul.f32 %v866_v16, %v277_v17  ;;  %v282_v27 = vld [vmem:[%s861_s24 + $0x28] sm:$0xff]  ;;  %v298_v33 = vmul.f32 %v866_v16, %v278_v26  ;;  %v283_v48 = vld [vmem:[%s861_s24 + $0x30] sm:$0xff]  ;;  %v299_v59 = vmul.f32 %v866_v16, %v279_v47 }
  0x13   : > { %v874_v20 = vld [vmem:[%s972_s4] ss:$0 sm:$0xff]  ;;  %v301_v21 = vmul.f32 %v866_v16, %v281_v18  ;;  %v302_v34 = vmul.f32 %v866_v16, %v282_v27  ;;  %v286_v45 = vld [vmem:[%s861_s24 + $0x48] sm:$0xff]  ;;  %v303_v60 = vmul.f32 %v866_v16, %v283_v48  ;;  %v284_v17 = vld [vmem:[%s861_s24 + $0x38] sm:$0xff] }
  0x14   : > { %483 = vmatpush.bf16.msra.mxu0 %v736_v2  ;;  %745 = vmatpush.bf16.msra.mxu1 %v736_v2  ;;  %v317_v22 = vadd.f32 %v874_v20, %v297_v19  ;;  %v285_v24 = vld [vmem:[%s861_s24 + $0x40] sm:$0xff]  ;;  %v318_v43 = vadd.f32 %v874_v20, %v298_v33  ;;  %v290_v46 = vld [vmem:[%s861_s24 + $0x68] sm:$0xff]  ;;  %v306_v53 = vmul.f32 %v866_v16, %v286_v45  ;;  %v292_v47 = vld [vmem:[%s861_s24 + $0x78] sm:$0xff] }
  0x15   : > { %746 = vmatpush.bf16.msra.mxu2 %v736_v2  ;;  %747 = vmatpush.bf16.msra.mxu3 %v736_v2  ;;  %v321_v23 = vadd.f32 %v874_v20, %v301_v21  ;;  %v289_v25 = vld [vmem:[%s861_s24 + $0x60] sm:$0xff]  ;;  %v305_v29 = vmul.f32 %v866_v16, %v285_v24  ;;  %v322_v44 = vadd.f32 %v874_v20, %v302_v34 }
  0x16   : > { %v886_v28 = vld [vmem:[%s973_s5] ss:$0 sm:$0xff]  ;;  %v309_v30 = vmul.f32 %v866_v16, %v289_v25  ;;  %v333_v31 = vmax.f32 %v317_v22, 0.0  ;;  %v310_v54 = vmul.f32 %v866_v16, %v290_v46  ;;  %v334_v57 = vmax.f32 %v318_v43, 0.0  ;;  %v288_v46 = vld [vmem:[%s861_s24 + $0x58] sm:$0xff] }
  0x17   : > { %v337_v32 = vmax.f32 %v321_v23, 0.0  ;;  %v325_v39 = vadd.f32 %v874_v20, %v305_v29  ;;  %v338_v58 = vmax.f32 %v322_v44, 0.0 }
  0x18   : > { %484 = vmatpush.bf16.msra.mxu0 %v735_v3  ;;  %748 = vmatpush.bf16.msra.mxu1 %v735_v3  ;;  %v329_v40 = vadd.f32 %v874_v20, %v309_v30 }
  0x19   : > { %749 = vmatpush.bf16.msra.mxu2 %v735_v3  ;;  %750 = vmatpush.bf16.msra.mxu3 %v735_v3  ;;  %v341_v51 = vmax.f32 %v325_v39, 0.0 }
  0x1a   : > { %v345_v52 = vmax.f32 %v329_v40, 0.0 }
  0x1c   : > { %485 = vmatpush.bf16.msra.mxu0 %v734_v4  ;;  %751 = vmatpush.bf16.msra.mxu1 %v734_v4 }
  0x1d   : > { %752 = vmatpush.bf16.msra.mxu2 %v734_v4  ;;  %753 = vmatpush.bf16.msra.mxu3 %v734_v4 }
  0x20   : > { %486 = vmatpush.bf16.msra.mxu0 %v733_v5  ;;  %754 = vmatpush.bf16.msra.mxu1 %v733_v5 }
  0x21   : > { %755 = vmatpush.bf16.msra.mxu2 %v733_v5  ;;  %756 = vmatpush.bf16.msra.mxu3 %v733_v5  ;;  %v326_v5 = vadd.f32 %v874_v20, %v306_v53 }
  0x23   : > { %v342_v21 = vmax.f32 %v326_v5, 0.0 }
  0x24   : > { %487 = vmatpush.bf16.msra.mxu0 %v732_v6  ;;  %757 = vmatpush.bf16.msra.mxu1 %v732_v6 }
  0x25   : > { %758 = vmatpush.bf16.msra.mxu2 %v732_v6  ;;  %759 = vmatpush.bf16.msra.mxu3 %v732_v6  ;;  %v330_v6 = vadd.f32 %v874_v20, %v310_v54  ;;  %v308_v54 = vmul.f32 %v866_v16, %v288_v46 }
  0x27   : > { %v346_v22 = vmax.f32 %v330_v6, 0.0 }
  0x28   : > { %488 = vmatpush.bf16.msra.mxu0 %v731_v7  ;;  %760 = vmatpush.bf16.msra.mxu1 %v731_v7 }
  0x29   : > { %761 = vmatpush.bf16.msra.mxu2 %v731_v7  ;;  %762 = vmatpush.bf16.msra.mxu3 %v731_v7 }
  0x2b   : > { %489 = vmatmul.bf16.vlgmr.msra.gmra.mxu0 %v723_v8  ;;  %499 = vmatmul.bf16.vlgmr.msra.gmra.mxu1 %v725_v9  ;;  %v319_v9 = vadd.f32 %v874_v20, %v299_v59 }
  0x2c   : > { %509 = vmatmul.bf16.vlgmr.msra.gmra.mxu2 %v727_v10  ;;  %519 = vmatmul.bf16.vlgmr.msra.gmra.mxu3 %v729_v11  ;;  %v323_v10 = vadd.f32 %v874_v20, %v303_v60  ;;  %v287_v11 = vld [vmem:[%s861_s24 + $0x50] sm:$0xff] }
  0x2d   : > { %v307_v23 = vmul.f32 %v866_v16, %v287_v11  ;;  %v335_v27 = vmax.f32 %v319_v9, 0.0 }
  0x2e   : > { %v339_v29 = vmax.f32 %v323_v10, 0.0 }
  0x2f   : > { %v327_v40 = vadd.f32 %v874_v20, %v307_v23 }
  0x3b   : > { %494 = vmatmul.bf16.gmra.mxu0 %v724_v12  ;;  %504 = vmatmul.bf16.gmra.mxu1 %v726_v13  ;;  %v291_v12 = vld [vmem:[%s861_s24 + $0x70] sm:$0xff] }
  0x3c   : > { %514 = vmatmul.bf16.gmra.mxu2 %v728_v14  ;;  %524 = vmatmul.bf16.gmra.mxu3 %v730_v15  ;;  %v280_v15 = vld [vmem:[%s861_s24 + $0x18] sm:$0xff]  ;;  %v311_v24 = vmul.f32 %v866_v16, %v291_v12 }
  0x3d   : > { %v300_v30 = vmul.f32 %v866_v16, %v280_v15 }
  0x3f   : > { %v320_v44 = vadd.f32 %v874_v20, %v300_v30 }
  0xa8   : > { %v490_v35 = vpop.f32.mrf.mxu0  ;;  %v500_v36 = vpop.f32.mrf.mxu1 }
  0xa9   : > { %v491_v37 = vadd.f32 %v886_v28, %v490_v35  ;;  %v501_v38 = vadd.f32 %v886_v28, %v500_v36 }
  0xab   : > { %v530_v41 = vadd.f32 %v491_v37, %v333_v31  ;;  %v534_v42 = vadd.f32 %v501_v38, %v337_v32  ;;  %v304_v31 = vmul.f32 %v866_v16, %v284_v17 }
  0xad   : > { %v546_v49 = vmax.f32 %v530_v41, 0.0  ;;  %v550_v50 = vmax.f32 %v534_v42, 0.0  ;;  %v331_v41 = vadd.f32 %v874_v20, %v311_v24  ;;  %v324_v45 = vadd.f32 %v874_v20, %v304_v31 }
  0xaf   : > { %562 = vst [vmem:[%s905_s10] sm:$0xff] %v546_v49  ;;  %v510_v55 = vpop.f32.mrf.mxu2  ;;  %v520_v56 = vpop.f32.mrf.mxu3  ;;  %v347_v53 = vmax.f32 %v331_v41, 0.0  ;;  %v340_v59 = vmax.f32 %v324_v45, 0.0 }
  0xb0   : > { %566 = vst [vmem:[%s905_s10 + $0x20] sm:$0xff] %v550_v50  ;;  %v511_v61 = vadd.f32 %v886_v28, %v510_v55  ;;  %v521_v62 = vadd.f32 %v886_v28, %v520_v56  ;;  %v492_v63 = vpop.f32.mrf.mxu0  ;;  %v502_v0 = vpop.f32.mrf.mxu1  ;;  %v312_v55 = vmul.f32 %v866_v16, %v292_v47 }
  0xb1   : > { %v493_v1 = vadd.f32 %v886_v28, %v492_v63  ;;  %v503_v2 = vadd.f32 %v886_v28, %v502_v0 }
  0xb2   : > { %v538_v3 = vadd.f32 %v511_v61, %v341_v51  ;;  %v542_v4 = vadd.f32 %v521_v62, %v345_v52  ;;  %v343_v52 = vmax.f32 %v327_v40, 0.0 }
  0xb3   : > { %v531_v7 = vadd.f32 %v493_v1, %v334_v57  ;;  %v535_v8 = vadd.f32 %v503_v2, %v338_v58  ;;  %v336_v58 = vmax.f32 %v320_v44, 0.0 }
  0xb4   : > { %v554_v13 = vmax.f32 %v538_v3, 0.0  ;;  %v558_v14 = vmax.f32 %v542_v4, 0.0  ;;  %v328_v3 = vadd.f32 %v874_v20, %v308_v54  ;;  %v332_v4 = vadd.f32 %v874_v20, %v312_v55 }
  0xb5   : > { %v547_v18 = vmax.f32 %v531_v7, 0.0  ;;  %v551_v19 = vmax.f32 %v535_v8, 0.0 }
  0xb6   : > { %570 = vst [vmem:[%s905_s10 + $0x40] sm:$0xff] %v554_v13  ;;  %v344_v11 = vmax.f32 %v328_v3, 0.0  ;;  %v348_v12 = vmax.f32 %v332_v4, 0.0 }
  0xb7   : > { %574 = vst [vmem:[%s905_s10 + $0x60] sm:$0xff] %v558_v14  ;;  %v512_v25 = vpop.f32.mrf.mxu2  ;;  %v522_v26 = vpop.f32.mrf.mxu3 }
  0xb8   : > { %563 = vst [vmem:[%s905_s10 + $0x8] sm:$0xff] %v547_v18  ;;  %v513_v32 = vadd.f32 %v886_v28, %v512_v25  ;;  %v523_v33 = vadd.f32 %v886_v28, %v522_v26  ;;  %v495_v34 = vpop.f32.mrf.mxu0  ;;  %v505_v35 = vpop.f32.mrf.mxu1 }
  0xb9   : > { %567 = vst [vmem:[%s905_s10 + $0x28] sm:$0xff] %v551_v19  ;;  %v496_v36 = vadd.f32 %v886_v28, %v495_v34  ;;  %v506_v37 = vadd.f32 %v886_v28, %v505_v35 }
  0xba   : > { %v539_v38 = vadd.f32 %v513_v32, %v342_v21  ;;  %v543_v39 = vadd.f32 %v523_v33, %v346_v22 }
  0xbb   : > { %v532_v42 = vadd.f32 %v496_v36, %v335_v27  ;;  %v536_v43 = vadd.f32 %v506_v37, %v339_v29 }
  0xbc   : > { %v555_v48 = vmax.f32 %v539_v38, 0.0  ;;  %v559_v49 = vmax.f32 %v543_v39, 0.0 }
  0xbd   : > { %v548_v50 = vmax.f32 %v532_v42, 0.0  ;;  %v552_v51 = vmax.f32 %v536_v43, 0.0 }
  0xbe   : > { %571 = vst [vmem:[%s905_s10 + $0x48] sm:$0xff] %v555_v48 }
  0xbf   : > { %575 = vst [vmem:[%s905_s10 + $0x68] sm:$0xff] %v559_v49  ;;  %v515_v56 = vpop.f32.mrf.mxu2  ;;  %v525_v57 = vpop.f32.mrf.mxu3 }
  0xc0   : > { %564 = vst [vmem:[%s905_s10 + $0x10] sm:$0xff] %v548_v50  ;;  %v516_v60 = vadd.f32 %v886_v28, %v515_v56  ;;  %v526_v61 = vadd.f32 %v886_v28, %v525_v57  ;;  %v497_v62 = vpop.f32.mrf.mxu0  ;;  %v507_v63 = vpop.f32.mrf.mxu1 }
  0xc1   : > { %568 = vst [vmem:[%s905_s10 + $0x30] sm:$0xff] %v552_v51  ;;  %v498_v0 = vadd.f32 %v886_v28, %v497_v62  ;;  %v508_v1 = vadd.f32 %v886_v28, %v507_v63 }
  0xc2   : > { %v540_v16 = vadd.f32 %v516_v60, %v343_v52  ;;  %v544_v2 = vadd.f32 %v526_v61, %v347_v53 }
  0xc3   : > { %v533_v5 = vadd.f32 %v498_v0, %v336_v58  ;;  %v537_v6 = vadd.f32 %v508_v1, %v340_v59 }
  0xc4   : > { %v556_v7 = vmax.f32 %v540_v16, 0.0  ;;  %v560_v8 = vmax.f32 %v544_v2, 0.0 }
  0xc5   : > { %v549_v9 = vmax.f32 %v533_v5, 0.0  ;;  %v553_v10 = vmax.f32 %v537_v6, 0.0 }
  0xc6   : > { %572 = vst [vmem:[%s905_s10 + $0x50] sm:$0xff] %v556_v7 }
  0xc7   : > { %576 = vst [vmem:[%s905_s10 + $0x70] sm:$0xff] %v560_v8  ;;  %v517_v13 = vpop.f32.mrf.mxu2  ;;  %v527_v14 = vpop.f32.mrf.mxu3 }
  0xc8   : > { %565 = vst [vmem:[%s905_s10 + $0x18] sm:$0xff] %v549_v9  ;;  %v518_v15 = vadd.f32 %v886_v28, %v517_v13  ;;  %v528_v20 = vadd.f32 %v886_v28, %v527_v14 }
  0xc9   : > { %569 = vst [vmem:[%s905_s10 + $0x38] sm:$0xff] %v553_v10 }
  0xca   : > { %v541_v17 = vadd.f32 %v518_v15, %v344_v11  ;;  %v545_v18 = vadd.f32 %v528_v20, %v348_v12 }
  0xcc   : > { %v557_v19 = vmax.f32 %v541_v17, 0.0  ;;  %v561_v21 = vmax.f32 %v545_v18, 0.0 }
  0xce   : > { %573 = vst [vmem:[%s905_s10 + $0x58] sm:$0xff] %v557_v19 }
  0xcf   : > { %577 = vst [vmem:[%s905_s10 + $0x78] sm:$0xff] %v561_v21 }
  0xd0 PF: > { %s16_s21 = sadd.s32 1, %s780_s21  }
  0xd1   : > { %p13_p4 = scmp.ge.s32.totalorder %s16_s21, 6  }
  0xd3   :  { %15 = sbr.rel (!%p13_p4) target bundleno = 1 (0x1), region = 77 }

// kernel: resblock_forward.4
= control target key start
LH: loop header
LB: loop body
LE: loop exit
PB: predicated region body
PF: predicated region fallthrough
CT: control target
= control target key end

     0   :  { %s3335_s18 = smov 0   ;;  %s4484_s0 = inlined_call_operand.vmem [shape: bf16[512,128], index: 0, kind: input, shape index: {}]   ;;  %s4485_s1 = inlined_call_operand.vmem [shape: bf16[512,128], index: 1, kind: input, shape index: {}]   ;;  %s4486_s2 = inlined_call_operand.vmem [shape: bf16[512,128], index: 2, kind: input, shape index: {}]   ;;  %s4487_s3 = inlined_call_operand.vmem [shape: bf16[9,128,128], index: 3, kind: input, shape index: {}]   ;;  %s4488_s4 = inlined_call_operand.vmem [shape: f32[512,128], index: 4, kind: output, shape index: {0}]   ;;  %s4489_s5 = inlined_call_operand.vmem [shape: f32[2,128], index: 5, kind: output, shape index: {1}]  }
   0x1 LB: > { %s2603_s19 = sadd.s32 4294967295, %s3300_s18   ;;  %p2607_p0 = scmp.ge.s32.totalorder %s3300_s18, 1  ;;  %s3300_s18 = sphi %s3335_s18, %s16_s18  }
   0x2   : > { %p208_p1 = scmp.lt.s32.totalorder %s3300_s18, 5 }
   0x4   : > { %p209_p2 = pnand %p2607_p0, %p208_p1 }
   0x5   : > { %s2608_s28 = sshll.u32 (!%p209_p2), %s2603_s19, 4  ;;  %p3160_p4 = scmp.ne.s32.totalorder (!%p209_p2), %s2603_s19, 0 }
   0x6   : > { %212 = sbr.rel (%p209_p2) target bundleno = 512 (0x200), region = 36  ;;  %p247_p3 = scmp.lt.s32.totalorder (!%p209_p2), %s2608_s28, 63 }
   0xb   : > { %v3186_v0 = vld [vmem:[%s4487_s3 + $0x78] sm:$0xff]  ;;  %v3185_v1 = vld [vmem:[%s4487_s3 + $0x70] sm:$0xff]  ;;  %v3184_v2 = vld [vmem:[%s4487_s3 + $0x68] sm:$0xff]  ;;  %s4634_s28 = smov (!%p247_p3, %s2608_s28), 63  ;;  %v289_v7 = vlaneseq  ;;  %vm3302_vm3 = vmmov 0   ;;  %v3303_v35 = vmov 0  }
   0xc   : > { %3259 = vmatpush.bf16.msra.mxu1 %v3186_v0  ;;  %3260 = vmatpush.bf16.msra.mxu2 %v3186_v0  ;;  %v3183_v3 = vld [vmem:[%s4487_s3 + $0x60] sm:$0xff]  ;;  %v3182_v4 = vld [vmem:[%s4487_s3 + $0x58] sm:$0xff]  ;;  %v3181_v5 = vld [vmem:[%s4487_s3 + $0x50] sm:$0xff]  ;;  %s3369_s10 = sshll.u32 %s4634_s28, 2  ;;  %v3518_v63 = vunpack.c.l.b16 %v3303_v35  ;;  %vm4500_vm6 = vsmask.f32 256 }
   0xd   : > { %3261 = vmatpush.bf16.msra.mxu3 %v3186_v0  ;;  %1009 = vmatpush.bf16.msra.mxu0 %v3186_v0  ;;  %v3180_v6 = vld [vmem:[%s4487_s3 + $0x48] sm:$0xff]  ;;  %v3179_v8 = vld [vmem:[%s4487_s3 + $0x40] sm:$0xff]  ;;  %s3378_s15 = scalar_lea.vmem %s4484_s0, %s3369_s10  ;;  %v3380_v9 = vshrl.u32 %v289_v7, 7  ;;  %v3194_v10 = vld [vmem:[%s4487_s3 + $0xb8] sm:$0xff]  ;;  %s3457_s29 = scalar_lea.vmem %s4485_s1, %s3369_s10  ;;  %v3521_v0 = vunpack.c.h.b16 %v3303_v35  ;;  %vm4490_vm7 = vcmask 1040384  }
   0xe   : > { %v3178_v11 = vld [vmem:[%s4487_s3 + $0x38] sm:$0xff]  ;;  %v3389_v12 = vld [vmem:[%s3378_s15 + $0x10] sm:$0xff]  ;;  %v3392_v13 = vld [vmem:[%s3378_s15 + $0x20] sm:$0xff]  ;;  %vm4492_vm13 = vsmask.f32 7424  ;;  %s4101_s6 = scalar_lea.vmem %s4486_s2, %s3369_s10  ;;  %s2615_s10 = sshll.u32 %s4634_s28, 3 }
   0xf   : > { %v3395_v14 = vld [vmem:[%s3378_s15 + $0x30] sm:$0xff]  ;;  %v3398_v15 = vld [vmem:[%s3378_s15] sm:$0xff]  ;;  %v3210_v16 = vld [vmem:[%s4487_s3 + $0xf8] sm:$0xff]  ;;  %v291_v18 = vadd.s32 8, %v3380_v9  ;;  %v310_v21 = vand.u32 15, %v3380_v9  ;;  %v292_v44 = vadd.s32 16, %v3380_v9  ;;  %s4358_s9 = scalar_lea.vmem %s4488_s4, %s2615_s10 }
  0x10   : > { %3262 = vmatpush.bf16.msra.mxu1 %v3185_v1  ;;  %3263 = vmatpush.bf16.msra.mxu2 %v3185_v1  ;;  %v3218_v17 = vld [vmem:[%s4487_s3 + $0x138] sm:$0xff]  ;;  %v3193_v19 = vld [vmem:[%s4487_s3 + $0xb0] sm:$0xff]  ;;  %v3192_v25 = vld [vmem:[%s4487_s3 + $0xa8] sm:$0xff]  ;;  %v556_v49 = vshrl.u32 %v3398_v15, 16  ;;  %v559_v52 = vshll.u32 %v3398_v15, 16  ;;  %v293_v53 = vadd.s32 24, %v3380_v9 }
  0x11   : > { %3264 = vmatpush.bf16.msra.mxu3 %v3185_v1  ;;  %1010 = vmatpush.bf16.msra.mxu0 %v3185_v1  ;;  %v3177_v20 = vld [vmem:[%s4487_s3 + $0x30] sm:$0xff]  ;;  %v317_v24 = vand.u32 15, %v291_v18  ;;  %v3176_v26 = vld [vmem:[%s4487_s3 + $0x28] sm:$0xff]  ;;  %vm3430_vm0 = vcmp.eq.s32.totalorder %v310_v21, 0  ;;  %v3191_v31 = vld [vmem:[%s4487_s3 + $0xa0] sm:$0xff]  ;;  %v324_v59 = vand.u32 15, %v292_v44 }
  0x12   : > { %v3209_v22 = vld [vmem:[%s4487_s3 + $0xf0] sm:$0xff]  ;;  %v3208_v28 = vld [vmem:[%s4487_s3 + $0xe8] sm:$0xff]  ;;  %vm629_vm1 = vmpackc.low %vm3430_vm0, %vm3430_vm0 }
  0x13   : > { %v3217_v23 = vld [vmem:[%s4487_s3 + $0x130] sm:$0xff]  ;;  %v3216_v29 = vld [vmem:[%s4487_s3 + $0x128] sm:$0xff]  ;;  %vm3443_vm2 = vcmp.eq.s32.totalorder %v317_v24, 15  ;;  %v3175_v32 = vld [vmem:[%s4487_s3 + $0x20] sm:$0xff]  ;;  %v645_v36 = vsel %vm629_vm1, 65537, %v3303_v35  ;;  %vm3539_vm8 = vcmp.eq.s32.totalorder %v324_v59, 0 }
  0x14   : > { %3265 = vmatpush.bf16.msra.mxu1 %v3184_v2  ;;  %3266 = vmatpush.bf16.msra.mxu2 %v3184_v2  ;;  %vm630_vm4 = vmpackc.low %vm3302_vm3, %vm3302_vm3  ;;  %v3207_v33 = vld [vmem:[%s4487_s3 + $0xe0] sm:$0xff]  ;;  %v3190_v38 = vld [vmem:[%s4487_s3 + $0x98] sm:$0xff]  ;;  %v661_v47 = vunpack.c.l.b16 %v645_v36 }
  0x15   : > { %3267 = vmatpush.bf16.msra.mxu3 %v3184_v2  ;;  %1011 = vmatpush.bf16.msra.mxu0 %v3184_v2  ;;  %vm801_vm5 = vmpackc.low %vm3443_vm2, %vm3443_vm2  ;;  %v3215_v34 = vld [vmem:[%s4487_s3 + $0x120] sm:$0xff]  ;;  %v646_v37 = vsel %vm630_vm4, 65537, %v3303_v35  ;;  %v3174_v39 = vld [vmem:[%s4487_s3 + $0x18] sm:$0xff]  ;;  %v3526_v2 = vrot.slane %v556_v49, 7 }
  0x16   : > { %v3477_v40 = vld [vmem:[%s3457_s29] sm:$0xff]  ;;  %v3480_v41 = vld [vmem:[%s3378_s15 + $0x18] sm:$0xff]  ;;  %v3483_v42 = vld [vmem:[%s3378_s15 + $0x28] sm:$0xff]  ;;  %v817_v43 = vsel %vm801_vm5, 65537, %v3303_v35  ;;  %v662_v48 = vunpack.c.l.b16 %v646_v37  ;;  %v2648_v61 = vunpack.i.l.s16 %v661_v47  ;;  %v294_v47 = vadd.s32 32, %v3380_v9 }
  0x17   : > { %v3488_v45 = vld [vmem:[%s3378_s15 + $0x38] sm:$0xff]  ;;  %v3491_v46 = vld [vmem:[%s3378_s15 + $0x8] sm:$0xff]  ;;  %v3189_v54 = vld [vmem:[%s4487_s3 + $0x90] sm:$0xff]  ;;  %v833_v56 = vunpack.c.l.b16 %v817_v43  ;;  %v1342_v57 = vshrl.u32 %v3477_v40, 16  ;;  %v561_v18 = vor.u32 %v559_v52, %v3526_v2 }
  0x18   : > { %3268 = vmatpush.bf16.msra.mxu1 %v3183_v3  ;;  %3269 = vmatpush.bf16.msra.mxu2 %v3183_v3  ;;  %v3206_v50 = vld [vmem:[%s4487_s3 + $0xd8] sm:$0xff]  ;;  %v3173_v55 = vld [vmem:[%s4487_s3 + $0x10] sm:$0xff]  ;;  %v566_v58 = vshll.u32 %v3491_v46, 16  ;;  %v2649_v62 = vunpack.i.l.s16 %v662_v48  ;;  %vm689_vm9 = vcmp.ne.s32.totalorder %v2648_v61, %v3518_v63  ;;  %vm3558_vm11 = vmand %vm4490_vm7, %vm4500_vm6 }
  0x19   : > { %3270 = vmatpush.bf16.msra.mxu3 %v3183_v3  ;;  %1012 = vmatpush.bf16.msra.mxu0 %v3183_v3  ;;  %v3214_v51 = vld [vmem:[%s4487_s3 + $0x118] sm:$0xff]  ;;  %v3205_v60 = vld [vmem:[%s4487_s3 + $0xd0] sm:$0xff]  ;;  %v766_v3 = vrot.slane %v559_v52, 1  ;;  %v2665_v7 = vunpack.i.l.s16 %v833_v56  ;;  %v3171_v24 = vld [vmem:[%s4487_s3] sm:$0xff] }
  0x1a   : > { %v3213_v1 = vld [vmem:[%s4487_s3 + $0x110] sm:$0xff]  ;;  %vm3545_vm10 = vcmp.ne.s32.totalorder %v2649_v62, %v3521_v0  ;;  %v3564_v21 = vrot.slane %v566_v58, 1  ;;  %vm3577_vm14 = vcmp.ne.s32.totalorder %v2649_v62, %v3518_v63  ;;  %vm631_vm0 = vmpackc.low %vm3539_vm8, %vm3539_vm8  ;;  %v3203_v30 = vld [vmem:[%s4487_s3 + $0xc0] sm:$0xff]  ;;  %v338_v62 = vand.u32 15, %v294_v47 }
  0x1b   : > { %vm861_vm15 = vcmp.ne.s32.totalorder %v2665_v7, %v3521_v0  ;;  %vm3592_vm1 = vmpackc.low %vm3545_vm10, %vm689_vm9  ;;  %v647_v36 = vsel %vm631_vm0, 65537, %v3303_v35  ;;  %v3631_v43 = vld [vmem:[%s3457_s29 + $0x8] sm:$0xff]  ;;  %v3257_v61 = vld [vmem:[%s4487_s3 + $0x230] sm:$0xff] }
  0x1c   : > { %3271 = vmatpush.bf16.msra.mxu1 %v3182_v4  ;;  %3272 = vmatpush.bf16.msra.mxu2 %v3182_v4  ;;  %vm3617_vm3 = vmpackc.low %vm861_vm15, %vm3577_vm14  ;;  %v1349_v59 = vshrl.u32 %v3631_v43, 16  ;;  %v3224_v7 = vld [vmem:[%s4487_s3 + $0x168] sm:$0xff]  ;;  %vm3682_vm4 = vcmp.eq.s32.totalorder %v338_v62, 0 }
  0x1d   : > { %3273 = vmatpush.bf16.msra.mxu3 %v3182_v4  ;;  %1013 = vmatpush.bf16.msra.mxu0 %v3182_v4  ;;  %v331_v4 = vand.u32 15, %v293_v53  ;;  %v3241_v53 = vld [vmem:[%s4487_s3 + $0x1b0] sm:$0xff] }
  0x1f   : > { %vm3566_vm12 = vcmp.eq.s32.totalorder %v331_v4, 15  ;;  %v574_v4 = vshll.u32 %v3389_v12, 16 }
  0x20   : > { %3274 = vmatpush.bf16.msra.mxu1 %v3181_v5  ;;  %3275 = vmatpush.bf16.msra.mxu2 %v3181_v5  ;;  %vm803_vm2 = vmpackc.low %vm3566_vm12, %vm3566_vm12 }
  0x21   : > { %3276 = vmatpush.bf16.msra.mxu3 %v3181_v5  ;;  %1014 = vmatpush.bf16.msra.mxu0 %v3181_v5  ;;  %v3188_v5 = vld [vmem:[%s4487_s3 + $0x88] sm:$0xff]  ;;  %v819_v44 = vsel %vm803_vm2, 65537, %v3303_v35  ;;  %vm633_vm12 = vmpackc.low %vm3682_vm4, %vm3682_vm4 }
  0x22   : > { %v835_v56 = vunpack.c.l.b16 %v819_v44  ;;  %v571_v44 = vshrl.u32 %v3389_v12, 16 }
  0x24   : > { %3277 = vmatpush.bf16.msra.mxu1 %v3180_v6  ;;  %3278 = vmatpush.bf16.msra.mxu2 %v3180_v6 }
  0x25   : > { %3279 = vmatpush.bf16.msra.mxu3 %v3180_v6  ;;  %1015 = vmatpush.bf16.msra.mxu0 %v3180_v6  ;;  %v3172_v6 = vld [vmem:[%s4487_s3 + $0x8] sm:$0xff] }
  0x28   : > { %3280 = vmatpush.bf16.msra.mxu1 %v3179_v8  ;;  %3281 = vmatpush.bf16.msra.mxu2 %v3179_v8 }
  0x29   : > { %3282 = vmatpush.bf16.msra.mxu3 %v3179_v8  ;;  %1016 = vmatpush.bf16.msra.mxu0 %v3179_v8  ;;  %v3536_v8 = vrot.slane %v1342_v57, 7 }
  0x2b   : > { %1027 = vmatmul.bf16.vlgmr.msra.gmra.mxu1 %v3389_v12  ;;  %1037 = vmatmul.bf16.vlgmr.msra.gmra.mxu2 %v3392_v13 }
  0x2c   : > { %1220 = vmatpush.bf16.msrb.mxu2 %v3194_v10  ;;  %1106 = vmatpush.bf16.msrb.mxu1 %v3178_v11  ;;  %v1345_v10 = vshll.u32 %v3477_v40, 16  ;;  %v2667_v11 = vunpack.i.l.s16 %v835_v56  ;;  %v582_v56 = vshll.u32 %v3480_v41, 16 }
  0x2d   : > { %1047 = vmatmul.bf16.vlgmr.msra.gmra.mxu3 %v3395_v14  ;;  %1017 = vmatmul.bf16.vlgmr.msra.gmra.mxu0 %v3398_v15 }
  0x2e   : > { %1526 = vmatpush.bf16.msrb.mxu3 %v3210_v16  ;;  %1664 = vmatpush.bf16.msrb.mxu0 %v3218_v17  ;;  %v3204_v16 = vld [vmem:[%s4487_s3 + $0xc8] sm:$0xff]  ;;  %vm868_vm9 = vcmp.ne.s32.totalorder %v2667_v11, %v3521_v0 }
  0x2f   : > { %v3212_v17 = vld [vmem:[%s4487_s3 + $0x108] sm:$0xff]  ;;  %vm3718_vm2 = vmpackc.low %vm868_vm9, %vm3577_vm14 }
  0x30   : > { %1221 = vmatpush.bf16.msrb.mxu2 %v3193_v19  ;;  %1107 = vmatpush.bf16.msrb.mxu1 %v3177_v20  ;;  %v767_v20 = vor.u32 %v766_v3, %v556_v49 }
  0x32   : > { %1527 = vmatpush.bf16.msrb.mxu3 %v3209_v22  ;;  %1665 = vmatpush.bf16.msrb.mxu0 %v3217_v23  ;;  %v3187_v23 = vld [vmem:[%s4487_s3 + $0x80] sm:$0xff]  ;;  %v4545_v22 = vmov 0 }
  0x34   : > { %1222 = vmatpush.bf16.msrb.mxu2 %v3192_v25  ;;  %1108 = vmatpush.bf16.msrb.mxu1 %v3176_v26  ;;  %v1347_v26 = vor.u32 %v1345_v10, %v3536_v8 }
  0x36   : > { %1528 = vmatpush.bf16.msrb.mxu3 %v3208_v28  ;;  %1666 = vmatpush.bf16.msrb.mxu0 %v3216_v29  ;;  %v3242_v28 = vld [vmem:[%s4487_s3 + $0x1b8] sm:$0xff]  ;;  %v1412_v37 = vsel %vm3558_vm11, 0, %v1347_v26  ;;  %v771_v26 = vrot.slane %v574_v4, 1 }
  0x37   : > { %v3226_v29 = vld [vmem:[%s4487_s3 + $0x178] sm:$0xff]  ;;  %v1413_v52 = vsel %vm3592_vm1, 0, %v1412_v37  ;;  %v296_v37 = vadd.s32 48, %v3380_v9 }
  0x38   : > { %1223 = vmatpush.bf16.msrb.mxu2 %v3191_v31  ;;  %1109 = vmatpush.bf16.msrb.mxu1 %v3175_v32  ;;  %v3211_v31 = vld [vmem:[%s4487_s3 + $0x100] sm:$0xff]  ;;  %v628_v32 = vsel %vm3558_vm11, 0, %v561_v18  ;;  %v3248_v18 = vld [vmem:[%s4487_s3 + $0x1e8] sm:$0xff]  ;;  %v773_v11 = vor.u32 %v771_v26, %v571_v44 }
  0x39   : > { %v741_v48 = vsel %vm3592_vm1, 0, %v628_v32 }
  0x3a   : > { %1529 = vmatpush.bf16.msrb.mxu3 %v3207_v33  ;;  %1667 = vmatpush.bf16.msrb.mxu0 %v3215_v34  ;;  %v769_v33 = vsel %vm4492_vm13, %v767_v20, %v3564_v21  ;;  %v3256_v20 = vld [vmem:[%s4487_s3 + $0x228] sm:$0xff] }
  0x3b   : > { %1032 = vmatmul.bf16.gmra.mxu1 %v3480_v41  ;;  %1042 = vmatmul.bf16.gmra.mxu2 %v3483_v42  ;;  %v912_v49 = vsel %vm3617_vm3, 0, %v769_v33  ;;  %v3726_v33 = vld [vmem:[%s3457_s29 + $0x10] sm:$0xff] }
  0x3c   : > { %1224 = vmatpush.bf16.msrb.mxu2 %v3190_v38  ;;  %1110 = vmatpush.bf16.msrb.mxu1 %v3174_v39  ;;  %v3250_v38 = vld [vmem:[%s4487_s3 + $0x1f8] sm:$0xff] }
  0x3d   : > { %1052 = vmatmul.bf16.gmra.mxu3 %v3488_v45  ;;  %1022 = vmatmul.bf16.gmra.mxu0 %v3491_v46  ;;  %v3258_v39 = vld [vmem:[%s4487_s3 + $0x238] sm:$0xff] }
  0x3e   : > { %1530 = vmatpush.bf16.msrb.mxu3 %v3206_v50  ;;  %1668 = vmatpush.bf16.msrb.mxu0 %v3214_v51  ;;  %v663_v50 = vunpack.c.l.b16 %v647_v36  ;;  %v563_v51 = vshrl.u32 %v3491_v46, 16  ;;  %v4539_v46 = vmov 0 }
  0x40   : > { %1225 = vmatpush.bf16.msrb.mxu2 %v3189_v54  ;;  %1111 = vmatpush.bf16.msrb.mxu1 %v3173_v55  ;;  %v3225_v54 = vld [vmem:[%s4487_s3 + $0x170] sm:$0xff]  ;;  %v295_v55 = vadd.s32 40, %v3380_v9  ;;  %v3662_v3 = vrot.slane %v563_v51, 7 }
  0x42   : > { %1531 = vmatpush.bf16.msrb.mxu3 %v3205_v60  ;;  %1669 = vmatpush.bf16.msrb.mxu0 %v3213_v1  ;;  %v3249_v60 = vld [vmem:[%s4487_s3 + $0x1f0] sm:$0xff]  ;;  %v2650_v1 = vunpack.i.l.s16 %v663_v50  ;;  %v352_v50 = vand.u32 15, %v296_v37 }
  0x44   : > { %1226 = vmatpush.bf16.msrb.mxu2 %v3188_v5  ;;  %1112 = vmatpush.bf16.msrb.mxu1 %v3172_v6  ;;  %v345_v5 = vand.u32 15, %v295_v55  ;;  %v3240_v6 = vld [vmem:[%s4487_s3 + $0x1a8] sm:$0xff]  ;;  %vm696_vm5 = vcmp.ne.s32.totalorder %v2650_v1, %v3518_v63  ;;  %v3749_v55 = vrot.slane %v571_v44, 7  ;;  %vm3760_vm4 = vcmp.eq.s32.totalorder %v352_v50, 0  ;;  %v3238_v44 = vld [vmem:[%s4487_s3 + $0x198] sm:$0xff] }
  0x45   : > { %vm3706_vm15 = vmpackc.low %vm3545_vm10, %vm696_vm5 }
  0x46   : > { %1532 = vmatpush.bf16.msrb.mxu3 %v3204_v16  ;;  %1670 = vmatpush.bf16.msrb.mxu0 %v3212_v17  ;;  %v3673_v16 = vrot.slane %v1349_v59, 7  ;;  %v1352_v17 = vshll.u32 %v3631_v43, 16  ;;  %vm3693_vm8 = vcmp.eq.s32.totalorder %v345_v5, 15  ;;  %v4540_v46 = vsel %vm3706_vm15, 4294967295, %v4539_v46 }
  0x47   : > { %vm805_vm0 = vmpackc.low %vm3693_vm8, %vm3693_vm8  ;;  %v1360_v5 = vshll.u32 %v3726_v33, 16 }
  0x48   : > { %1227 = vmatpush.bf16.msrb.mxu2 %v3187_v23  ;;  %1113 = vmatpush.bf16.msrb.mxu1 %v3171_v24  ;;  %v568_v23 = vor.u32 %v566_v58, %v3662_v3  ;;  %v770_v24 = vor.u32 %v3564_v21, %v563_v51  ;;  %v821_v36 = vsel %vm805_vm0, 65537, %v3303_v35 }
  0x4a   : > { %1533 = vmatpush.bf16.msrb.mxu3 %v3203_v30  ;;  %1671 = vmatpush.bf16.msrb.mxu0 %v3211_v31  ;;  %v569_v58 = vsel %vm4500_vm6, %v3526_v2, %v568_v23  ;;  %v772_v21 = vsel %vm4492_vm13, %v770_v24, %v771_v26  ;;  %v649_v31 = vsel %vm633_vm12, 65537, %v3303_v35  ;;  %vm635_vm12 = vmpackc.low %vm3760_vm4, %vm3760_vm4  ;;  %v4547_v23 = vmov 0 }
  0x4b   : > { %1114 = vmatmul.bf16.vlgmr.msrb.gmra.mxu1 %v741_v48  ;;  %1228 = vmatmul.bf16.vlgmr.msrb.gmra.mxu2 %v912_v49  ;;  %v742_v2 = vsel %vm3706_vm15, 0, %v569_v58  ;;  %v837_v48 = vunpack.c.l.b16 %v821_v36  ;;  %v4516_v49 = vshrl.u32 %v3726_v33, 16  ;;  %v651_v24 = vsel %vm635_vm12, 65537, %v3303_v35 }
  0x4c   : > { %2100 = vmatpush.bf16.msra.mxu2 %v3242_v28  ;;  %1794 = vmatpush.bf16.msra.mxu1 %v3226_v29  ;;  %v1354_v29 = vor.u32 %v1352_v17, %v3673_v16  ;;  %v3794_v28 = vld [vmem:[%s3457_s29 + $0x18] sm:$0xff]  ;;  %v298_v58 = vadd.s32 64, %v3380_v9  ;;  %v4597_v30 = vshrl.u32 %v3726_v33, 16 }
  0x4d   : > { %1534 = vmatmul.bf16.vlgmr.msrb.gmra.mxu3 %v1413_v52  ;;  %1672 = vmatmul.bf16.vlgmr.msrb.gmra.mxu0 %v3477_v40  ;;  %v3239_v52 = vld [vmem:[%s4487_s3 + $0x1a0] sm:$0xff]  ;;  %v2669_v62 = vunpack.i.l.s16 %v837_v48  ;;  %v3757_v1 = vrot.slane %v4516_v49, 7  ;;  %v590_v48 = vshll.u32 %v3392_v13, 16 }
  0x4e   : > { %2238 = vmatpush.bf16.msra.mxu3 %v3250_v38  ;;  %2368 = vmatpush.bf16.msra.mxu0 %v3258_v39  ;;  %v1355_v32 = vsel %vm4500_vm6, %v3536_v8, %v1354_v29  ;;  %v913_v38 = vsel %vm3718_vm2, 0, %v772_v21  ;;  %v665_v39 = vunpack.c.l.b16 %v649_v31  ;;  %v297_v8 = vadd.s32 56, %v3380_v9 }
  0x4f   : > { %v1414_v47 = vsel %vm3706_vm15, 0, %v1355_v32  ;;  %vm875_vm9 = vcmp.ne.s32.totalorder %v2669_v62, %v3521_v0  ;;  %v667_v31 = vunpack.c.l.b16 %v651_v24  ;;  %v579_v32 = vshrl.u32 %v3480_v41, 16  ;;  %v3246_v41 = vld [vmem:[%s4487_s3 + $0x1d8] sm:$0xff]  ;;  %v3860_v24 = vld [vmem:[%s3457_s29 + $0x20] sm:$0xff] }
  0x50   : > { %2101 = vmatpush.bf16.msra.mxu2 %v3241_v53  ;;  %1795 = vmatpush.bf16.msra.mxu1 %v3225_v54  ;;  %v2652_v51 = vunpack.i.l.s16 %v665_v39  ;;  %v3247_v53 = vld [vmem:[%s4487_s3 + $0x1e0] sm:$0xff]  ;;  %vm3786_vm15 = vmpackc.low %vm875_vm9, %vm3577_vm14 }
  0x51   : > { %v3223_v54 = vld [vmem:[%s4487_s3 + $0x160] sm:$0xff]  ;;  %v4548_v23 = vsel %vm3786_vm15, 4294967295, %v4547_v23  ;;  %v2654_v39 = vunpack.i.l.s16 %v667_v31 }
  0x52   : > { %2239 = vmatpush.bf16.msra.mxu3 %v3249_v60  ;;  %2369 = vmatpush.bf16.msra.mxu0 %v3257_v61  ;;  %v359_v60 = vand.u32 15, %v297_v8  ;;  %v3255_v61 = vld [vmem:[%s4487_s3 + $0x220] sm:$0xff]  ;;  %vm703_vm5 = vcmp.ne.s32.totalorder %v2652_v51, %v3518_v63  ;;  %v3817_v8 = vrot.slane %v579_v32, 7  ;;  %v3254_v51 = vld [vmem:[%s4487_s3 + $0x218] sm:$0xff] }
  0x53   : > { %vm3777_vm0 = vmpackc.low %vm3545_vm10, %vm703_vm5  ;;  %vm710_vm4 = vcmp.ne.s32.totalorder %v2654_v39, %v3518_v63  ;;  %v3221_v39 = vld [vmem:[%s4487_s3 + $0x150] sm:$0xff] }
  0x54   : > { %2102 = vmatpush.bf16.msra.mxu2 %v3240_v6  ;;  %1796 = vmatpush.bf16.msra.mxu1 %v3224_v7  ;;  %v576_v7 = vor.u32 %v574_v4, %v3749_v55  ;;  %vm756_vm8 = vcmp.eq.s32.totalorder %v359_v60, 15  ;;  %v4546_v22 = vsel %vm3777_vm0, 4294967295, %v4545_v22  ;;  %v777_v6 = vrot.slane %v590_v48, 1  ;;  %vm3843_vm12 = vmpackc.low %vm3545_vm10, %vm710_vm4 }
  0x55   : > { %vm807_vm7 = vmpackc.low %vm756_vm8, %vm756_vm8  ;;  %v4513_v60 = vshll.u32 %v3860_v24, 16 }
  0x56   : > { %2240 = vmatpush.bf16.msra.mxu3 %v3248_v18  ;;  %2370 = vmatpush.bf16.msra.mxu0 %v3256_v20  ;;  %v774_v18 = vrot.slane %v582_v56, 1  ;;  %v1362_v20 = vor.u32 %v1360_v5, %v3757_v1  ;;  %v577_v12 = vsel %vm4500_vm6, %v3662_v3, %v576_v7  ;;  %v823_v29 = vsel %vm807_vm7, 65537, %v3303_v35 }
  0x57   : > { %v743_v3 = vsel %vm3777_vm0, 0, %v577_v12  ;;  %v839_v37 = vunpack.c.l.b16 %v823_v29  ;;  %v300_v29 = vadd.s32 80, %v3380_v9 }
  0x58   : > { %2103 = vmatpush.bf16.msra.mxu2 %v3239_v52  ;;  %1797 = vmatpush.bf16.msra.mxu1 %v3223_v54  ;;  %v775_v4 = vsel %vm4492_vm13, %v773_v11, %v774_v18  ;;  %v1363_v26 = vsel %vm4500_vm6, %v3673_v16, %v1362_v20  ;;  %v299_v16 = vadd.s32 72, %v3380_v9  ;;  %v4515_v54 = vshll.u32 %v3794_v28, 16 }
  0x59   : > { %v914_v21 = vsel %vm3786_vm15, 0, %v775_v4  ;;  %v1415_v36 = vsel %vm3777_vm0, 0, %v1363_v26  ;;  %v2671_v52 = vunpack.i.l.s16 %v839_v37  ;;  %v776_v62 = vor.u32 %v774_v18, %v579_v32 }
  0x5a   : > { %2241 = vmatpush.bf16.msra.mxu3 %v3247_v53  ;;  %2371 = vmatpush.bf16.msra.mxu0 %v3255_v61  ;;  %v373_v50 = vand.u32 15, %v299_v16  ;;  %v584_v61 = vor.u32 %v582_v56, %v3817_v8  ;;  %v4551_v11 = vmov 0  ;;  %vm4553_vm0 = vsmask.f32 7424 }
  0x5b   : > { %1119 = vmatmul.bf16.gmra.mxu1 %v742_v2  ;;  %1233 = vmatmul.bf16.gmra.mxu2 %v913_v38  ;;  %v4514_v2 = vshrl.u32 %v3794_v28, 16  ;;  %v366_v38 = vand.u32 15, %v298_v58  ;;  %vm882_vm8 = vcmp.ne.s32.totalorder %v2671_v52, %v3521_v0  ;;  %v4552_v11 = vsel %vm3843_vm12, 4294967295, %v4551_v11 }
  0x5c   : > { %2104 = vmatpush.bf16.msra.mxu2 %v3238_v44  ;;  %vm758_vm5 = vcmp.eq.s32.totalorder %v373_v50, 15  ;;  %v585_v56 = vsel %vm4500_vm6, %v3749_v55, %v584_v61  ;;  %v778_v18 = vsel %vm4553_vm0, %v776_v62, %v777_v6  ;;  %vm3852_vm15 = vmpackc.low %vm882_vm8, %vm3577_vm14  ;;  %v4554_v20 = vmov 0  ;;  %v3253_v50 = vld [vmem:[%s4487_s3 + $0x210] sm:$0xff] }
  0x5d   : > { %1539 = vmatmul.bf16.gmra.mxu3 %v1414_v47  ;;  %1677 = vmatmul.bf16.gmra.mxu0 %v3631_v43  ;;  %v3222_v47 = vld [vmem:[%s4487_s3 + $0x158] sm:$0xff]  ;;  %v3825_v53 = vrot.slane %v4514_v2, 7  ;;  %vm3828_vm7 = vcmp.eq.s32.totalorder %v366_v38, 0  ;;  %vm809_vm13 = vmpackc.low %vm758_vm5, %vm758_vm5  ;;  %v4555_v20 = vsel %vm3852_vm15, 4294967295, %v4554_v20  ;;  %v744_v55 = vsel %vm3843_vm12, 0, %v585_v56  ;;  %v3237_v38 = vld [vmem:[%s4487_s3 + $0x190] sm:$0xff] }
  0x5e   : > { %2242 = vmatpush.bf16.msra.mxu3 %v3246_v41  ;;  %1798 = vmatpush.bf16.msra.mxu1 %v3222_v47  ;;  %vm637_vm9 = vmpackc.low %vm3828_vm7, %vm3828_vm7  ;;  %v825_v26 = vsel %vm809_vm13, 65537, %v3303_v35  ;;  %v915_v58 = vsel %vm3852_vm15, 0, %v778_v18  ;;  %v380_v16 = vand.u32 15, %v300_v29  ;;  %v598_v41 = vshll.u32 %v3483_v42, 16 }
  0x5f   : > { %2372 = vmatpush.bf16.msra.mxu0 %v3254_v51  ;;  %v1370_v7 = vor.u32 %v4515_v54, %v3825_v53  ;;  %v653_v12 = vsel %vm637_vm9, 65537, %v3303_v35  ;;  %v841_v32 = vunpack.c.l.b16 %v825_v26 }
  0x60   : > { %2105 = vmatpush.bf16.msra.mxu2 %v3237_v38  ;;  %vm3894_vm13 = vcmp.eq.s32.totalorder %v380_v16, 0  ;;  %v780_v56 = vrot.slane %v598_v41, 1 }
  0x61   : > { %v1371_v4 = vsel %vm4500_vm6, %v3757_v1, %v1370_v7  ;;  %v301_v1 = vadd.s32 88, %v3380_v9  ;;  %v2673_v51 = vunpack.i.l.s16 %v841_v32  ;;  %vm639_vm5 = vmpackc.low %vm3894_vm13, %vm3894_vm13 }
  0x62   : > { %v1416_v31 = vsel %vm3843_vm12, 0, %v1371_v4  ;;  %1799 = vmatpush.bf16.msra.mxu1 %v3221_v39  ;;  %vm4560_vm12 = vsmask.f32 7424  ;;  %v4561_v4 = vmov 0  ;;  %v655_v26 = vsel %vm639_vm5, 65537, %v3303_v35  ;;  %v3236_v39 = vld [vmem:[%s4487_s3 + $0x188] sm:$0xff] }
  0x63   : > { %v387_v47 = vand.u32 15, %v301_v1  ;;  %2373 = vmatpush.bf16.msra.mxu0 %v3253_v50  ;;  %vm889_vm4 = vcmp.ne.s32.totalorder %v2673_v51, %v3521_v0  ;;  %v595_v1 = vshrl.u32 %v3483_v42, 16  ;;  %v3244_v42 = vld [vmem:[%s4487_s3 + $0x1c8] sm:$0xff]  ;;  %v606_v50 = vshll.u32 %v3395_v14, 16 }
  0x64   : > { %vm3918_vm15 = vmpackc.low %vm889_vm4, %vm3577_vm14  ;;  %2106 = vmatpush.bf16.msra.mxu2 %v3236_v39  ;;  %v304_v39 = vadd.s32 112, %v3380_v9 }
  0x65   : > { %vm760_vm7 = vcmp.eq.s32.totalorder %v387_v47, 15  ;;  %v4562_v4 = vsel %vm3918_vm15, 4294967295, %v4561_v4  ;;  %v3946_v47 = vrot.slane %v595_v1, 7 }
  0x66   : > { %vm811_vm9 = vmpackc.low %vm760_vm7, %vm760_vm7 }
  0x6b   : > { %1124 = vmatmul.bf16.gmra.mxu1 %v743_v3  ;;  %1238 = vmatmul.bf16.gmra.mxu2 %v914_v21  ;;  %v669_v3 = vunpack.c.l.b16 %v653_v12  ;;  %v587_v21 = vshrl.u32 %v3392_v13, 16  ;;  %v3245_v13 = vld [vmem:[%s4487_s3 + $0x1d0] sm:$0xff]  ;;  %v4558_v12 = vmov 0 }
  0x6c   : > { %2243 = vmatpush.bf16.msra.mxu3 %v3245_v13 }
  0x6d   : > { %1544 = vmatmul.bf16.gmra.mxu3 %v1415_v36  ;;  %1682 = vmatmul.bf16.gmra.mxu0 %v3726_v33  ;;  %v4512_v36 = vshrl.u32 %v3860_v24, 16  ;;  %v2656_v37 = vunpack.i.l.s16 %v669_v3  ;;  %v3883_v44 = vrot.slane %v587_v21, 7  ;;  %v779_v7 = vor.u32 %v777_v6, %v587_v21 }
  0x6e   : > { %v827_v3 = vsel %vm811_vm9, 65537, %v3303_v35 }
  0x6f   : > { %v3891_v52 = vrot.slane %v4512_v36, 7  ;;  %vm717_vm0 = vcmp.ne.s32.totalorder %v2656_v37, %v3518_v63  ;;  %v592_v62 = vor.u32 %v590_v48, %v3883_v44  ;;  %v781_v6 = vsel %vm4560_vm12, %v779_v7, %v780_v56 }
  0x70   : > { %vm3909_vm8 = vmpackc.low %vm3545_vm10, %vm717_vm0  ;;  %v916_v21 = vsel %vm3918_vm15, 0, %v781_v6  ;;  %v843_v16 = vunpack.c.l.b16 %v827_v3  ;;  %2244 = vmatpush.bf16.msra.mxu3 %v3244_v42  ;;  %v600_v6 = vor.u32 %v598_v41, %v3946_v47  ;;  %v3252_v3 = vld [vmem:[%s4487_s3 + $0x208] sm:$0xff]  ;;  %v603_v42 = vshrl.u32 %v3395_v14, 16  ;;  %v3243_v14 = vld [vmem:[%s4487_s3 + $0x1c0] sm:$0xff] }
  0x71   : > { %v1378_v18 = vor.u32 %v4513_v60, %v3891_v52  ;;  %v4559_v12 = vsel %vm3909_vm8, 4294967295, %v4558_v12  ;;  %v593_v48 = vsel %vm4500_vm6, %v3817_v8, %v592_v62  ;;  %2374 = vmatpush.bf16.msra.mxu0 %v3252_v3 }
  0x72   : > { %v745_v8 = vsel %vm3909_vm8, 0, %v593_v48  ;;  %v2675_v61 = vunpack.i.l.s16 %v843_v16  ;;  %v3220_v48 = vld [vmem:[%s4487_s3 + $0x148] sm:$0xff] }
  0x73   : > { %v1379_v29 = vsel %vm4500_vm6, %v3825_v53, %v1378_v18  ;;  %v303_v53 = vadd.s32 104, %v3380_v9  ;;  %1800 = vmatpush.bf16.msra.mxu1 %v3220_v48 }
  0x74   : > { %v1417_v32 = vsel %vm3909_vm8, 0, %v1379_v29  ;;  %v783_v29 = vrot.slane %v606_v50, 1  ;;  %vm896_vm4 = vcmp.ne.s32.totalorder %v2675_v61, %v3521_v0  ;;  %2245 = vmatpush.bf16.msra.mxu3 %v3243_v14 }
  0x75   : > { %v401_v51 = vand.u32 15, %v303_v53  ;;  %vm3992_vm8 = vmpackc.low %vm896_vm4, %vm3577_vm14  ;;  %v3999_v53 = vld [vmem:[%s3457_s29 + $0x30] sm:$0xff] }
  0x76   : > { %v4508_v18 = vshrl.u32 %v3999_v53, 16 }
  0x77   : > { %vm3966_vm7 = vcmp.eq.s32.totalorder %v401_v51, 15 }
  0x78   : > { %vm813_vm9 = vmpackc.low %vm3966_vm7, %vm3966_vm7 }
  0x7b   : > { %1129 = vmatmul.bf16.gmra.mxu1 %v744_v55  ;;  %1243 = vmatmul.bf16.gmra.mxu2 %v915_v58  ;;  %v3926_v55 = vld [vmem:[%s3457_s29 + $0x28] sm:$0xff]  ;;  %v302_v58 = vadd.s32 96, %v3380_v9 }
  0x7c   : > { %v4510_v37 = vshrl.u32 %v3926_v55, 16  ;;  %v4511_v7 = vshll.u32 %v3926_v55, 16 }
  0x7d   : > { %1549 = vmatmul.bf16.gmra.mxu3 %v1416_v31  ;;  %1687 = vmatmul.bf16.gmra.mxu0 %v3794_v28  ;;  %v671_v31 = vunpack.c.l.b16 %v655_v26  ;;  %v394_v38 = vand.u32 15, %v302_v58  ;;  %v782_v26 = vor.u32 %v780_v56, %v595_v1  ;;  %v4567_v56 = vmov 0 }
  0x7e   : > { %v3951_v62 = vrot.slane %v4510_v37, 7  ;;  %v4570_v1 = vmov 0  ;;  %v605_v58 = vrot.slane %v603_v42, 7 }
  0x7f   : > { %v2658_v13 = vunpack.i.l.s16 %v671_v31  ;;  %vm3954_vm12 = vcmp.eq.s32.totalorder %v394_v38, 0  ;;  %v4571_v1 = vsel %vm3992_vm8, 4294967295, %v4570_v1  ;;  %v829_v38 = vsel %vm813_vm9, 65537, %v3303_v35 }
  0x80   : > { %vm641_vm0 = vmpackc.low %vm3954_vm12, %vm3954_vm12  ;;  %v1386_v41 = vor.u32 %v4511_v7, %v3951_v62  ;;  %vm4569_vm12 = vsmask.f32 7424  ;;  %v845_v61 = vunpack.c.l.b16 %v829_v38  ;;  %v785_v38 = vor.u32 %v783_v29, %v603_v42 }
  0x81   : > { %vm724_vm13 = vcmp.ne.s32.totalorder %v2658_v13, %v3518_v63  ;;  %v784_v31 = vsel %vm4569_vm12, %v782_v26, %v783_v29  ;;  %v3235_v26 = vld [vmem:[%s4487_s3 + $0x180] sm:$0xff] }
  0x82   : > { %vm3979_vm5 = vmpackc.low %vm3545_vm10, %vm724_vm13  ;;  %2107 = vmatpush.bf16.msra.mxu2 %v3235_v26 }
  0x83   : > { %v4568_v56 = vsel %vm3979_vm5, 4294967295, %v4567_v56 }
  0x8b   : > { %1134 = vmatmul.bf16.gmra.mxu1 %v745_v8  ;;  %1248 = vmatmul.bf16.gmra.mxu2 %v916_v21  ;;  %v657_v8 = vsel %vm641_vm0, 65537, %v3303_v35  ;;  %v601_v21 = vsel %vm4500_vm6, %v3883_v44, %v600_v6  ;;  %v917_v44 = vsel %vm3992_vm8, 0, %v784_v31  ;;  %v408_v6 = vand.u32 15, %v304_v39  ;;  %v3219_v31 = vld [vmem:[%s4487_s3 + $0x140] sm:$0xff] }
  0x8c   : > { %v673_v16 = vunpack.c.l.b16 %v657_v8  ;;  %v746_v13 = vsel %vm3979_vm5, 0, %v601_v21  ;;  %v4022_v8 = vrot.slane %v4508_v18, 7  ;;  %v4509_v21 = vshll.u32 %v3999_v53, 16  ;;  %1801 = vmatpush.bf16.msra.mxu1 %v3219_v31  ;;  %v3251_v39 = vld [vmem:[%s4487_s3 + $0x200] sm:$0xff] }
  0x8d   : > { %1554 = vmatmul.bf16.gmra.mxu3 %v1417_v32  ;;  %1692 = vmatmul.bf16.gmra.mxu0 %v3860_v24  ;;  %v1387_v32 = vsel %vm4500_vm6, %v3891_v52, %v1386_v41  ;;  %v305_v52 = vadd.s32 120, %v3380_v9  ;;  %v614_v9 = vshll.u32 %v3488_v45, 16  ;;  %v2677_v41 = vunpack.i.l.s16 %v845_v61 }
  0x8e   : > { %v1418_v51 = vsel %vm3979_vm5, 0, %v1387_v32  ;;  %v2660_v48 = vunpack.i.l.s16 %v673_v16  ;;  %vm4029_vm0 = vcmp.eq.s32.totalorder %v408_v6, 0  ;;  %v608_v16 = vor.u32 %v606_v50, %v605_v58  ;;  %2375 = vmatpush.bf16.msra.mxu0 %v3251_v39  ;;  %v4069_v6 = vld [vmem:[%s3457_s29 + $0x38] sm:$0xff] }
  0x8f   : > { %v415_v3 = vand.u32 15, %v305_v52  ;;  %vm903_vm9 = vcmp.ne.s32.totalorder %v2677_v41, %v3521_v0  ;;  %v1394_v50 = vor.u32 %v4509_v21, %v4022_v8  ;;  %vm643_vm12 = vmpackc.low %vm4029_vm0, %vm4029_vm0  ;;  %vm4579_vm5 = vsmask.f32 7424 }
  0x90   : > { %vm731_vm13 = vcmp.ne.s32.totalorder %v2660_v48, %v3518_v63  ;;  %vm4061_vm8 = vmpackc.low %vm903_vm9, %vm3577_vm14  ;;  %v659_v48 = vsel %vm643_vm12, 65537, %v3303_v35  ;;  %v611_v41 = vshrl.u32 %v3488_v45, 16  ;;  %v4630_v52 = vshrl.u32 %v4069_v6, 16 }
  0x91   : > { %vm4033_vm7 = vcmp.eq.s32.totalorder %v415_v3, 15  ;;  %vm4042_vm4 = vmpackc.low %vm3545_vm10, %vm731_vm13  ;;  %vm4578_vm13 = vsmask.f32 256  ;;  %v675_v32 = vunpack.c.l.b16 %v659_v48 }
  0x92   : > { %vm815_vm6 = vmpackc.low %vm4033_vm7, %vm4033_vm7  ;;  %v609_v29 = vsel %vm4578_vm13, %v3946_v47, %v608_v16 }
  0x93   : > { %vm4582_vm15 = vmmov %vm4578_vm13  ;;  %v831_v26 = vsel %vm815_vm6, 65537, %v3303_v35  ;;  %v747_v47 = vsel %vm4042_vm4, 0, %v609_v29  ;;  %v613_v35 = vrot.slane %v611_v41, 7  ;;  %v4507_v29 = vshll.u32 %v4069_v6, 16 }
  0x94   : > { %v1395_v61 = vsel %vm4582_vm15, %v3951_v62, %v1394_v50  ;;  %v847_v16 = vunpack.c.l.b16 %v831_v26  ;;  %vm797_vm6 = vcmask 1047552   ;;  %vm4587_vm12 = vmmov %vm4578_vm13 }
  0x95   : > { %v1419_v62 = vsel %vm4042_vm4, 0, %v1395_v61  ;;  %v616_v26 = vor.u32 %v614_v9, %v613_v35  ;;  %vm4104_vm0 = vmand %vm797_vm6, %vm4579_vm5 }
  0x96   : > { %v2679_v45 = vunpack.i.l.s16 %v847_v16  ;;  %vm4590_vm6 = vmmov %vm4587_vm12 }
  0x98   : > { %vm910_vm7 = vcmp.ne.s32.totalorder %v2679_v45, %v3521_v0  ;;  %v3227_v0 = vld [vmem:[%s4101_s6] sm:$0xff] }
  0x99   : > { %vm4122_vm13 = vmpackc.low %vm910_vm7, %vm3577_vm14 }
  0x9a   : > { %vm4592_vm14 = vmmov %vm4579_vm5 }
  0x9b   : > { %1139 = vmatmul.bf16.gmra.mxu1 %v746_v13  ;;  %1253 = vmatmul.bf16.gmra.mxu2 %v917_v44  ;;  %v786_v13 = vrot.slane %v614_v9, 1  ;;  %v2662_v44 = vunpack.i.l.s16 %v675_v32  ;;  %v617_v9 = vsel %vm4587_vm12, %v605_v58, %v616_v26  ;;  %v1919_v26 = vshll.u32 %v3227_v0, 16 }
  0x9c   : > { %vm4602_vm12 = vnez %v4548_v23  ;;  %v4604_v23 = vshrl.u32 %v3794_v28, 16 }
  0x9d   : > { %1559 = vmatmul.bf16.gmra.mxu3 %v1418_v51  ;;  %1697 = vmatmul.bf16.gmra.mxu0 %v3926_v55  ;;  %v787_v42 = vsel %vm4579_vm5, %v785_v38, %v786_v13  ;;  %v4506_v38 = vshrl.u32 %v4069_v6, 16  ;;  %vm738_vm15 = vcmp.ne.s32.totalorder %v2662_v44, %v3518_v63 }
  0x9e   : > { %v918_v3 = vsel %vm4061_vm8, 0, %v787_v42  ;;  %vm4113_vm9 = vmpackc.low %vm3545_vm10, %vm738_vm15  ;;  %vm4596_vm15 = vnez %v4540_v46 }
  0x9f   : > { %v1399_v50 = vrot.slane %v4506_v38, 7  ;;  %v748_v58 = vsel %vm4113_vm9, 0, %v617_v9  ;;  %vm4591_vm10 = vmmov %vm4579_vm5 }
  0xa8   : > { %v4072_v14 = vpop.f32.mrf.mxu1 }
  0xaa   : > { %v4079_v31 = vpop.f32.mrf.mxu0 }
  0xab   : > { %1144 = vmatmul.bf16.gmra.mxu1 %v747_v47  ;;  %1258 = vmatmul.bf16.gmra.mxu2 %v918_v3  ;;  %v788_v47 = vor.u32 %v786_v13, %v611_v41 }
  0xad   : > { %1564 = vmatmul.bf16.gmra.mxu3 %v1419_v62  ;;  %1702 = vmatmul.bf16.gmra.mxu0 %v3999_v53  ;;  %v1402_v62 = vor.u32 %v4507_v29, %v1399_v50  ;;  %v799_v13 = vsel %vm4104_vm0, %v788_v47, 0  ;;  %v1916_v50 = vshrl.u32 %v3227_v0, 16  ;;  %v4144_v47 = vld [vmem:[%s4101_s6 + $0x8] sm:$0xff] }
  0xae   : > { %v4085_v39 = vpop.f32.mrf.mxu2  ;;  %v919_v25 = vsel %vm4122_vm13, 0, %v799_v13  ;;  %v1995_v13 = vrot.slane %v1919_v26, 1  ;;  %v1926_v38 = vshll.u32 %v4144_v47, 16 }
  0xaf   : > { %v1403_v15 = vsel %vm4590_vm6, %v4022_v8, %v1402_v62  ;;  %v1421_v8 = vrot.slane %v1345_v10, 1  ;;  %v1918_v62 = vrot.slane %v1916_v50, 7 }
  0xb0   : > { %v4090_v42 = vpop.f32.mrf.mxu3  ;;  %v4092_v61 = vpop.f32.mrf.mxu1  ;;  %v1420_v45 = vsel %vm4113_vm9, 0, %v1403_v15  ;;  %v1997_v21 = vrot.slane %v1926_v38, 1 }
  0xb1   : > { %v1921_v10 = vor.u32 %v1919_v26, %v1918_v62 }
  0xb2   : > { %v4094_v48 = vpop.f32.mrf.mxu0 }
  0xb3   : > { %v1986_v7 = vsel %vm3558_vm11, 0, %v1921_v10  ;;  %vm4593_vm11 = vmmov %vm4579_vm5 }
  0xb6   : > { %v4127_v32 = vpop.f32.mrf.mxu2 }
  0xb8   : > { %v4131_v16 = vpop.f32.mrf.mxu3  ;;  %v4133_v35 = vpop.f32.mrf.mxu1 }
  0xba   : > { %v4139_v44 = vpop.f32.mrf.mxu0 }
  0xbb   : > { %1149 = vmatmul.bf16.gmra.mxu1 %v748_v58  ;;  %1263 = vmatmul.bf16.gmra.mxu2 %v919_v25  ;;  %v1422_v58 = vor.u32 %v1421_v8, %v1342_v57  ;;  %v1423_v25 = vrot.slane %v1352_v17, 1  ;;  %v1987_v17 = vsel %vm3592_vm1, 0, %v1986_v7  ;;  %v1923_v8 = vshrl.u32 %v4144_v47, 16  ;;  %vm4594_vm1 = vmmov %vm4590_vm6 }
  0xbc   : > { %vm4603_vm6 = vnez %v4546_v22 }
  0xbd   : > { %1569 = vmatmul.bf16.gmra.mxu3 %v1420_v45  ;;  %1707 = vmatmul.bf16.gmra.mxu0 %v4069_v6  ;;  %v1996_v45 = vor.u32 %v1995_v13, %v1916_v50  ;;  %v1424_v37 = vsel %vm4591_vm10, %v1422_v58, %v1423_v25  ;;  %v4179_v13 = vld [vmem:[%s4101_s6 + $0x10] sm:$0xff]  ;;  %v1925_v58 = vrot.slane %v1923_v8, 7 }
  0xbe   : > { %v4149_v9 = vpop.f32.mrf.mxu2  ;;  %v1453_v57 = vsel %vm3617_vm3, 0, %v1424_v37  ;;  %v1934_v37 = vshll.u32 %v4179_v13, 16 }
  0xbf   : > { %v1998_v60 = vsel %vm4592_vm14, %v1996_v45, %v1997_v21  ;;  %vm4607_vm14 = vmmov %vm4594_vm1 }
  0xc0   : > { %v4152_v29 = vpop.f32.mrf.mxu3  ;;  %v4154_v15 = vpop.f32.mrf.mxu1  ;;  %v2027_v19 = vsel %vm3617_vm3, 0, %v1998_v60  ;;  %vm4595_vm3 = vmmov %vm4579_vm5 }
  0xc1   : > { %vm4600_vm5 = vmmov %vm4594_vm1 }
  0xc2   : > { %v4156_v18 = vpop.f32.mrf.mxu0 }
  0xc6   : > { %v4165_v36 = vpop.f32.mrf.mxu2 }
  0xc8   : > { %v4168_v2 = vpop.f32.mrf.mxu3  ;;  %v1115_v40 = vpop.f32.mrf.mxu1 }
  0xc9   : > { %v1116_v50 = vadd.f32 %v1115_v40, %v4079_v31  ;;  %v1425_v31 = vor.u32 %v1423_v25, %v1349_v59 }
  0xca   : > { %v1673_v26 = vpop.f32.mrf.mxu0 }
  0xcb   : > { %1802 = vmatmul.bf16.vlgmr.msra.gmra.mxu1 %v1453_v57  ;;  %2108 = vmatmul.bf16.vlgmr.msra.gmra.mxu2 %v1987_v17  ;;  %v1426_v57 = vrot.slane %v1360_v5, 1  ;;  %v1928_v17 = vor.u32 %v1926_v38, %v1925_v58 }
  0xcd   : > { %2246 = vmatmul.bf16.vlgmr.msra.gmra.mxu3 %v3227_v0  ;;  %2376 = vmatmul.bf16.vlgmr.msra.gmra.mxu0 %v2027_v19  ;;  %v1999_v0 = vor.u32 %v1997_v21, %v1923_v8  ;;  %v2000_v19 = vrot.slane %v1934_v37, 1 }
  0xce   : > { %v1229_v10 = vpop.f32.mrf.mxu2 }
  0xcf   : > { %v1269_v27 = vadd.f32 %v1229_v10, %v1116_v50  ;;  %v1427_v50 = vsel %vm4593_vm11, %v1425_v31, %v1426_v57  ;;  %v1929_v10 = vsel %vm4594_vm1, %v1918_v62, %v1928_v17  ;;  %v2001_v43 = vsel %vm4595_vm3, %v1999_v0, %v2000_v19 }
  0xd0   : > { %v1535_v7 = vpop.f32.mrf.mxu3  ;;  %v1117_v45 = vpop.f32.mrf.mxu1  ;;  %v1988_v5 = vsel %vm4596_vm15, 0, %v1929_v10  ;;  %v2028_v8 = vsel %vm3718_vm2, 0, %v2001_v43  ;;  %v1931_v62 = vshrl.u32 %v4179_v13, 16  ;;  %v1428_v17 = vor.u32 %v1426_v57, %v4597_v30 }
  0xd1   : > { %v1575_v34 = vadd.f32 %v1535_v7, %v1269_v27  ;;  %v1118_v60 = vadd.f32 %v1117_v45, %v4094_v48  ;;  %v1454_v27 = vsel %vm3718_vm2, 0, %v1427_v50  ;;  %v4201_v7 = vld [vmem:[%s4101_s6 + $0x18] sm:$0xff]  ;;  %vm4599_vm2 = vmmov %vm4595_vm3  ;;  %vm4609_vm1 = vnez %v4555_v20 }
  0xd2   : > { %v1675_v40 = vpop.f32.mrf.mxu0  ;;  %v1933_v46 = vrot.slane %v1931_v62, 7  ;;  %v1942_v31 = vshll.u32 %v4201_v7, 16  ;;  %vm4601_vm7 = vmmov %vm4599_vm2  ;;  %vm4610_vm3 = vnez %v4552_v11  ;;  %v4611_v20 = vshrl.u32 %v3860_v24, 16 }
  0xd3   : > { %v4187_v54 = vadd.f32 %v1673_v26, %v1575_v34  ;;  %vm4606_vm10 = vmmov %vm4599_vm2 }
  0xd4   : > { %vm4608_vm11 = vmmov %vm4599_vm2 }
  0xd5   : > { %vm4613_vm15 = vmmov %vm4599_vm2 }
  0xd6   : > { %v1231_v49 = vpop.f32.mrf.mxu2 }
  0xd7   : > { %v1270_v59 = vadd.f32 %v1231_v49, %v1118_v60 }
  0xd8   : > { %v1537_v25 = vpop.f32.mrf.mxu3  ;;  %v1120_v48 = vpop.f32.mrf.mxu1 }
  0xd9   : > { %v1576_v21 = vadd.f32 %v1537_v25, %v1270_v59  ;;  %v1121_v38 = vadd.f32 %v1120_v48, %v4139_v44  ;;  %v1936_v59 = vor.u32 %v1934_v37, %v1933_v46  ;;  %v2003_v25 = vrot.slane %v1942_v31, 1 }
  0xda   : > { %v1678_v26 = vpop.f32.mrf.mxu0 }
  0xdb   : > { %1807 = vmatmul.bf16.gmra.mxu1 %v1454_v27  ;;  %2113 = vmatmul.bf16.gmra.mxu2 %v1988_v5  ;;  %v4203_v49 = vadd.f32 %v1675_v40, %v1576_v21  ;;  %v4598_v40 = vshll.u32 %v3794_v28, 16  ;;  %v1937_v5 = vsel %vm4600_vm5, %v1925_v58, %v1936_v59  ;;  %v1939_v58 = vshrl.u32 %v4201_v7, 16 }
  0xdc   : > { %v1989_v37 = vsel %vm4603_vm6, 0, %v1937_v5 }
  0xdd   : > { %2251 = vmatmul.bf16.gmra.mxu3 %v4144_v47  ;;  %2381 = vmatmul.bf16.gmra.mxu0 %v2028_v8  ;;  %v1429_v43 = vrot.slane %v4598_v40, 1  ;;  %v2002_v47 = vor.u32 %v2000_v19, %v1931_v62  ;;  %v1941_v22 = vrot.slane %v1939_v58, 7 }
  0xde   : > { %v1234_v45 = vpop.f32.mrf.mxu2 }
  0xdf   : > { %v1271_v44 = vadd.f32 %v1234_v45, %v1121_v38  ;;  %v1430_v27 = vsel %vm4599_vm2, %v1428_v17, %v1429_v43  ;;  %v2004_v33 = vsel %vm4601_vm7, %v2002_v47, %v2003_v25  ;;  %v1944_v5 = vor.u32 %v1942_v31, %v1941_v22  ;;  %vm4614_vm2 = vmmov %vm4600_vm5 }
  0xe0   : > { %v1540_v34 = vpop.f32.mrf.mxu3  ;;  %v1122_v60 = vpop.f32.mrf.mxu1  ;;  %v1455_v8 = vsel %vm4602_vm12, 0, %v1430_v27  ;;  %v2029_v45 = vsel %vm4602_vm12, 0, %v2004_v33  ;;  %vm4615_vm5 = vmmov %vm4601_vm7  ;;  %vm4616_vm7 = vnez %v4562_v4  ;;  %vm4617_vm12 = vnez %v4559_v12 }
  0xe1   : > { %v1577_v0 = vadd.f32 %v1540_v34, %v1271_v44  ;;  %v1123_v50 = vadd.f32 %v1122_v60, %v4156_v18  ;;  %v4226_v44 = vld [vmem:[%s4101_s6 + $0x20] sm:$0xff]  ;;  %vm4620_vm6 = vmmov %vm4615_vm5 }
  0xe2   : > { %v1680_v10 = vpop.f32.mrf.mxu0  ;;  %v1950_v30 = vshll.u32 %v4226_v44, 16 }
  0xe3   : > { %v4212_v48 = vadd.f32 %v1678_v26, %v1577_v0 }
  0xe6   : > { %v1236_v21 = vpop.f32.mrf.mxu2 }
  0xe7   : > { %v1272_v57 = vadd.f32 %v1236_v21, %v1123_v50  ;;  %v1431_v50 = vor.u32 %v1429_v43, %v4604_v23  ;;  %v2006_v21 = vrot.slane %v1950_v30, 1 }
  0xe8   : > { %v1542_v38 = vpop.f32.mrf.mxu3  ;;  %v1125_v18 = vpop.f32.mrf.mxu1 }
  0xe9   : > { %v1578_v19 = vadd.f32 %v1542_v38, %v1272_v57  ;;  %v1126_v26 = vadd.f32 %v1125_v18, %v4072_v14  ;;  %v1945_v38 = vsel %vm4607_vm14, %v1933_v46, %v1944_v5  ;;  %v1947_v46 = vshrl.u32 %v4226_v44, 16  ;;  %vm4622_vm14 = vmmov %vm4615_vm5 }
  0xea   : > { %v1683_v62 = vpop.f32.mrf.mxu0  ;;  %v1990_v31 = vsel %vm4610_vm3, 0, %v1945_v38  ;;  %vm4627_vm3 = vmmov %vm4615_vm5 }
  0xeb   : > { %1812 = vmatmul.bf16.gmra.mxu1 %v1455_v8  ;;  %2118 = vmatmul.bf16.gmra.mxu2 %v1989_v37  ;;  %v4228_v34 = vadd.f32 %v1680_v10, %v1578_v19  ;;  %v4605_v10 = vshll.u32 %v3860_v24, 16  ;;  %v1949_v11 = vrot.slane %v1947_v46, 7 }
  0xed   : > { %2256 = vmatmul.bf16.gmra.mxu3 %v4179_v13  ;;  %2386 = vmatmul.bf16.gmra.mxu0 %v2029_v45  ;;  %v1432_v27 = vrot.slane %v4605_v10, 1  ;;  %v2005_v13 = vor.u32 %v2003_v25, %v1939_v58  ;;  %v4251_v45 = vld [vmem:[%s4101_s6 + $0x28] sm:$0xff]  ;;  %v1952_v5 = vor.u32 %v1950_v30, %v1949_v11 }
  0xee   : > { %v1239_v60 = vpop.f32.mrf.mxu2 }
  0xef   : > { %v1273_v14 = vadd.f32 %v1239_v60, %v1126_v26  ;;  %v1433_v57 = vsel %vm4606_vm10, %v1431_v50, %v1432_v27  ;;  %v2007_v28 = vsel %vm4608_vm11, %v2005_v13, %v2006_v21  ;;  %v1434_v23 = vor.u32 %v1432_v27, %v4611_v20  ;;  %vm4621_vm10 = vmmov %vm4614_vm2 }
  0xf0   : > { %v1545_v17 = vpop.f32.mrf.mxu3  ;;  %v1127_v0 = vpop.f32.mrf.mxu1  ;;  %v1456_v37 = vsel %vm4609_vm1, 0, %v1433_v57  ;;  %vm4623_vm11 = vnez %v4571_v1 }
  0xf1   : > { %v1579_v40 = vadd.f32 %v1545_v17, %v1273_v14  ;;  %v1128_v59 = vadd.f32 %v1127_v0, %v4092_v61  ;;  %v1958_v14 = vshll.u32 %v4251_v45, 16 }
  0xf2   : > { %v1685_v47 = vpop.f32.mrf.mxu0 }
  0xf3   : > { %v4237_v33 = vadd.f32 %v1683_v62, %v1579_v40  ;;  %v2030_v62 = vsel %vm4609_vm1, 0, %v2007_v28  ;;  %v2009_v13 = vrot.slane %v1958_v14, 1  ;;  %vm4624_vm1 = vnez %v4568_v56 }
  0xf6   : > { %v1241_v18 = vpop.f32.mrf.mxu2 }
  0xf7   : > { %v1274_v43 = vadd.f32 %v1241_v18, %v1128_v59  ;;  %v1953_v18 = vsel %vm4614_vm2, %v1941_v22, %v1952_v5  ;;  %v4275_v22 = vld [vmem:[%s4101_s6 + $0x30] sm:$0xff] }
  0xf8   : > { %v1547_v8 = vpop.f32.mrf.mxu3  ;;  %v1130_v61 = vpop.f32.mrf.mxu1  ;;  %v1991_v30 = vsel %vm4617_vm12, 0, %v1953_v18 }
  0xf9   : > { %v1580_v25 = vadd.f32 %v1547_v8, %v1274_v43  ;;  %v1131_v19 = vadd.f32 %v1130_v61, %v4133_v35 }
  0xfa   : > { %v1688_v26 = vpop.f32.mrf.mxu0 }
  0xfb   : > { %1817 = vmatmul.bf16.gmra.mxu1 %v1456_v37  ;;  %2123 = vmatmul.bf16.gmra.mxu2 %v1990_v31  ;;  %v4253_v58 = vadd.f32 %v1685_v47, %v1580_v25  ;;  %v4612_v47 = vshll.u32 %v3926_v55, 16  ;;  %v1955_v31 = vshrl.u32 %v4251_v45, 16 }
  0xfd   : > { %2261 = vmatmul.bf16.gmra.mxu3 %v4201_v7  ;;  %2391 = vmatmul.bf16.gmra.mxu0 %v2030_v62  ;;  %v1435_v10 = vrot.slane %v4612_v47, 1  ;;  %v2008_v7 = vor.u32 %v2006_v21, %v1947_v46  ;;  %v1957_v12 = vrot.slane %v1955_v31, 7  ;;  %v1966_v62 = vshll.u32 %v4275_v22, 16 }
  0xfe   : > { %v1244_v60 = vpop.f32.mrf.mxu2 }
  0xff   : > { %v1275_v35 = vadd.f32 %v1244_v60, %v1131_v19  ;;  %v1436_v38 = vsel %vm4613_vm15, %v1434_v23, %v1435_v10  ;;  %v2010_v24 = vsel %vm4615_vm5, %v2008_v7, %v2009_v13  ;;  %v4619_v23 = vshll.u32 %v3999_v53, 16  ;;  %vm4628_vm15 = vmmov %vm4614_vm2 }
 0x100   : > { %v1550_v17 = vpop.f32.mrf.mxu3  ;;  %v1132_v0 = vpop.f32.mrf.mxu1  ;;  %v1457_v8 = vsel %vm4616_vm7, 0, %v1436_v38  ;;  %v2031_v37 = vsel %vm4616_vm7, 0, %v2010_v24  ;;  %vm4629_vm2 = vmmov %vm4627_vm3 }
 0x101   : > { %v1581_v50 = vadd.f32 %v1550_v17, %v1275_v35  ;;  %v1133_v40 = vadd.f32 %v1132_v0, %v4154_v15  ;;  %v4618_v0 = vshrl.u32 %v3926_v55, 16 }
 0x102   : > { %v1690_v59 = vpop.f32.mrf.mxu0 }
 0x103   : > { %v4262_v57 = vadd.f32 %v1688_v26, %v1581_v50  ;;  %v1437_v20 = vor.u32 %v1435_v10, %v4618_v0  ;;  %v1438_v50 = vrot.slane %v4619_v23, 1 }
 0x105   : > { %v1439_v5 = vsel %vm4620_vm6, %v1437_v20, %v1438_v50 }
 0x106   : > { %v1246_v28 = vpop.f32.mrf.mxu2 }
 0x107   : > { %v1276_v27 = vadd.f32 %v1246_v28, %v1133_v40  ;;  %v1960_v40 = vor.u32 %v1958_v14, %v1957_v12  ;;  %v1458_v14 = vsel %vm4623_vm11, 0, %v1439_v5 }
 0x108   : > { %v1552_v43 = vpop.f32.mrf.mxu3  ;;  %v1135_v15 = vpop.f32.mrf.mxu1 }
 0x109   : > { %v1582_v21 = vadd.f32 %v1552_v43, %v1276_v27  ;;  %v1136_v19 = vadd.f32 %v1135_v15, %v4085_v39  ;;  %v1961_v7 = vsel %vm4621_vm10, %v1949_v11, %v1960_v40  ;;  %v1963_v43 = vshrl.u32 %v4275_v22, 16  ;;  %v4300_v11 = vld [vmem:[%s4101_s6 + $0x38] sm:$0xff] }
 0x10a   : > { %v1693_v61 = vpop.f32.mrf.mxu0 }
 0x10b   : > { %1822 = vmatmul.bf16.gmra.mxu1 %v1457_v8  ;;  %2128 = vmatmul.bf16.gmra.mxu2 %v1991_v30  ;;  %v4277_v25 = vadd.f32 %v1690_v59, %v1582_v21  ;;  %v2012_v59 = vrot.slane %v1966_v62, 1  ;;  %v1965_v56 = vrot.slane %v1963_v43, 7  ;;  %v1974_v21 = vshll.u32 %v4300_v11, 16 }
 0x10d   : > { %2266 = vmatmul.bf16.gmra.mxu3 %v4226_v44  ;;  %2396 = vmatmul.bf16.gmra.mxu0 %v2031_v37  ;;  %v2011_v44 = vor.u32 %v2009_v13, %v1955_v31  ;;  %v1992_v13 = vsel %vm4624_vm1, 0, %v1961_v7 }
 0x10e   : > { %v1249_v26 = vpop.f32.mrf.mxu2 }
 0x10f   : > { %v1277_v46 = vadd.f32 %v1249_v26, %v1136_v19  ;;  %v2013_v18 = vsel %vm4622_vm14, %v2011_v44, %v2012_v59  ;;  %v4625_v26 = vshrl.u32 %v3999_v53, 16 }
 0x110   : > { %v1555_v4 = vpop.f32.mrf.mxu3  ;;  %v1137_v60 = vpop.f32.mrf.mxu1 }
 0x111   : > { %v1583_v35 = vadd.f32 %v1555_v4, %v1277_v46  ;;  %v1138_v47 = vadd.f32 %v1137_v60, %v4127_v32  ;;  %v2032_v32 = vsel %vm4623_vm11, 0, %v2013_v18  ;;  %v1440_v46 = vor.u32 %v1438_v50, %v4625_v26 }
 0x112   : > { %v1695_v17 = vpop.f32.mrf.mxu0  ;;  %v4626_v4 = vshll.u32 %v4069_v6, 16 }
 0x113   : > { %v4286_v39 = vadd.f32 %v1693_v61, %v1583_v35  ;;  %v1968_v35 = vor.u32 %v1966_v62, %v1965_v56 }
 0x114   : > { %v1441_v60 = vrot.slane %v4626_v4, 1 }
 0x115   : > { %v1969_v23 = vsel %vm4628_vm15, %v1957_v12, %v1968_v35 }
 0x116   : > { %v1251_v38 = vpop.f32.mrf.mxu2  ;;  %v1442_v20 = vsel %vm4627_vm3, %v1440_v46, %v1441_v60  ;;  %v1993_v62 = vsel %vm4042_vm4, 0, %v1969_v23 }
 0x117   : > { %v1278_v55 = vadd.f32 %v1251_v38, %v1138_v47  ;;  %v1459_v5 = vsel %vm4061_vm8, 0, %v1442_v20  ;;  %v1971_v38 = vshrl.u32 %v4300_v11, 16 }
 0x118   : > { %v1557_v10 = vpop.f32.mrf.mxu3  ;;  %v1140_v28 = vpop.f32.mrf.mxu1 }
 0x119   : > { %v1584_v24 = vadd.f32 %v1557_v10, %v1278_v55  ;;  %v1141_v8 = vadd.f32 %v1140_v28, %v4149_v9  ;;  %v1973_v55 = vrot.slane %v1971_v38, 7 }
 0x11a   : > { %v1698_v27 = vpop.f32.mrf.mxu0 }
 0x11b   : > { %1827 = vmatmul.bf16.gmra.mxu1 %v1458_v14  ;;  %2133 = vmatmul.bf16.gmra.mxu2 %v1992_v13  ;;  %v4302_v15 = vadd.f32 %v1695_v17, %v1584_v24  ;;  %v2015_v17 = vrot.slane %v1974_v21, 1 }
 0x11d   : > { %2271 = vmatmul.bf16.gmra.mxu3 %v4251_v45  ;;  %2401 = vmatmul.bf16.gmra.mxu0 %v2032_v32  ;;  %v2014_v45 = vor.u32 %v2012_v59, %v1963_v43  ;;  %v1976_v32 = vor.u32 %v1974_v21, %v1973_v55  ;;  %v2017_v43 = vor.u32 %v2015_v17, %v1971_v38 }
 0x11e   : > { %v1254_v30 = vpop.f32.mrf.mxu2 }
 0x11f   : > { %v1279_v61 = vadd.f32 %v1254_v30, %v1141_v8  ;;  %v2016_v44 = vsel %vm4629_vm2, %v2014_v45, %v2015_v17 }
 0x120   : > { %v1560_v1 = vpop.f32.mrf.mxu3  ;;  %v1142_v37 = vpop.f32.mrf.mxu1 }
 0x121   : > { %v1585_v31 = vadd.f32 %v1560_v1, %v1279_v61  ;;  %v1143_v9 = vadd.f32 %v1142_v37, %v4165_v36  ;;  %v2033_v36 = vsel %vm4061_vm8, 0, %v2016_v44  ;;  %vm4631_vm8 = vmmov %vm4621_vm10  ;;  %v2026_v1 = vsel %vm4104_vm0, %v2017_v43, 0 }
 0x122   : > { %v1700_v19 = vpop.f32.mrf.mxu0  ;;  %v2034_v46 = vsel %vm4122_vm13, 0, %v2026_v1 }
 0x123   : > { %v4311_v0 = vadd.f32 %v1698_v27, %v1585_v31  ;;  %v1443_v27 = vor.u32 %v1441_v60, %v4630_v52 }
 0x126   : > { %v1256_v40 = vpop.f32.mrf.mxu2 }
 0x127   : > { %v1280_v47 = vadd.f32 %v1256_v40, %v1143_v9 }
 0x128   : > { %v1562_v53 = vpop.f32.mrf.mxu3  ;;  %v1145_v50 = vpop.f32.mrf.mxu1 }
 0x129   : > { %v1586_v59 = vadd.f32 %v1562_v53, %v1280_v47  ;;  %v1146_v18 = vadd.f32 %v1145_v50, %v4090_v42  ;;  %v1977_v42 = vsel %vm4631_vm8, %v1965_v56, %v1976_v32 }
 0x12a   : > { %v1703_v7 = vpop.f32.mrf.mxu0  ;;  %v1994_v21 = vsel %vm4113_vm9, 0, %v1977_v42 }
 0x12b   : > { %1832 = vmatmul.bf16.gmra.mxu1 %v1459_v5  ;;  %2138 = vmatmul.bf16.gmra.mxu2 %v1993_v62  ;;  %v4324_v12 = vadd.f32 %v1700_v19, %v1586_v59 }
 0x12d   : > { %2276 = vmatmul.bf16.gmra.mxu3 %v4275_v22  ;;  %2406 = vmatmul.bf16.gmra.mxu0 %v2033_v36  ;;  %v1452_v22 = vsel %vm4104_vm0, %v1443_v27, 0 }
 0x12e   : > { %v1259_v10 = vpop.f32.mrf.mxu2  ;;  %v1460_v6 = vsel %vm4122_vm13, 0, %v1452_v22 }
 0x12f   : > { %v1281_v51 = vadd.f32 %v1259_v10, %v1146_v18 }
 0x130   : > { %v1565_v28 = vpop.f32.mrf.mxu3  ;;  %v1147_v14 = vpop.f32.mrf.mxu1 }
 0x131   : > { %v1587_v13 = vadd.f32 %v1565_v28, %v1281_v51  ;;  %v1148_v30 = vadd.f32 %v1147_v14, %v4131_v16 }
 0x132   : > { %v1705_v24 = vpop.f32.mrf.mxu0 }
 0x133   : > { %v4330_v8 = vadd.f32 %v1703_v7, %v1587_v13 }
 0x136   : > { %v1261_v61 = vpop.f32.mrf.mxu2 }
 0x137   : > { %v1282_v37 = vadd.f32 %v1261_v61, %v1148_v30 }
 0x138   : > { %v1567_v31 = vpop.f32.mrf.mxu3  ;;  %v1150_v19 = vpop.f32.mrf.mxu1 }
 0x139   : > { %v1588_v26 = vadd.f32 %v1567_v31, %v1282_v37  ;;  %v1151_v3 = vadd.f32 %v1150_v19, %v4152_v29 }
 0x13a   : > { %v1708_v16 = vpop.f32.mrf.mxu0 }
 0x13b   : > { %1837 = vmatmul.bf16.gmra.mxu1 %v1460_v6  ;;  %2143 = vmatmul.bf16.gmra.mxu2 %v1994_v21  ;;  %v4344_v56 = vadd.f32 %v1705_v24, %v1588_v26 }
 0x13d   : > { %2281 = vmatmul.bf16.gmra.mxu3 %v4300_v11  ;;  %2411 = vmatmul.bf16.gmra.mxu0 %v2034_v46 }
 0x13e   : > { %v1264_v4 = vpop.f32.mrf.mxu2 }
 0x13f   : > { %v1283_v60 = vadd.f32 %v1264_v4, %v1151_v3 }
 0x140   : > { %v1570_v35 = vpop.f32.mrf.mxu3  ;;  %v1152_v63 = vpop.f32.mrf.mxu1 }
 0x141   : > { %v1589_v45 = vadd.f32 %v1570_v35, %v1283_v60  ;;  %v1153_v41 = vadd.f32 %v1152_v63, %v4168_v2 }
 0x142   : > { %v1710_v17 = vpop.f32.mrf.mxu0 }
 0x143   : > { %v4348_v9 = vadd.f32 %v1708_v16, %v1589_v45 }
 0x146   : > { %v1266_v20 = vpop.f32.mrf.mxu2 }
 0x147   : > { %v1284_v23 = vadd.f32 %v1266_v20, %v1153_v41 }
 0x148   : > { %v1572_v40 = vpop.f32.mrf.mxu3  ;;  %v1803_v44 = vpop.f32.mrf.mxu1 }
 0x149   : > { %v1590_v47 = vadd.f32 %v1572_v40, %v1284_v23  ;;  %v1843_v29 = vadd.f32 %v1803_v44, %v4187_v54 }
 0x14a   : > { %v2377_v11 = vpop.f32.mrf.mxu0 }
 0x14b   : > { %v4351_v53 = vadd.f32 %v1710_v17, %v1590_v47 }
 0x14e   : > { %v2109_v50 = vpop.f32.mrf.mxu2 }
 0x14f   : > { %v2149_v5 = vadd.f32 %v2109_v50, %v1843_v29 }
 0x150   : > { %v2247_v62 = vpop.f32.mrf.mxu3  ;;  %v1805_v59 = vpop.f32.mrf.mxu1 }
 0x151   : > { %v2287_v7 = vadd.f32 %v2247_v62, %v2149_v5  ;;  %v1844_v54 = vadd.f32 %v1805_v59, %v4203_v49 }
 0x152   : > { %v2379_v36 = vpop.f32.mrf.mxu0 }
 0x153   : > { %v4360_v2 = vadd.f32 %v2377_v11, %v2287_v7 }
 0x155   : > { %2433 = vst [vmem:[%s4358_s9] sm:$0xff] %v4360_v2 }
 0x156   : > { %v2111_v38 = vpop.f32.mrf.mxu2 }
 0x157   : > { %v2150_v18 = vadd.f32 %v2111_v38, %v1844_v54 }
 0x158   : > { %v2249_v55 = vpop.f32.mrf.mxu3  ;;  %v1808_v10 = vpop.f32.mrf.mxu1 }
 0x159   : > { %v2288_v51 = vadd.f32 %v2249_v55, %v2150_v18  ;;  %v1845_v13 = vadd.f32 %v1808_v10, %v4212_v48 }
 0x15a   : > { %v2382_v28 = vpop.f32.mrf.mxu0 }
 0x15b   : > { %v4365_v14 = vadd.f32 %v2379_v36, %v2288_v51 }
 0x15d   : > { %2434 = vst [vmem:[%s4358_s9 + $0x8] sm:$0xff] %v4365_v14 }
 0x15e   : > { %v2114_v24 = vpop.f32.mrf.mxu2 }
 0x15f   : > { %v2151_v52 = vadd.f32 %v2114_v24, %v1845_v13 }
 0x160   : > { %v2252_v27 = vpop.f32.mrf.mxu3  ;;  %v1810_v32 = vpop.f32.mrf.mxu1 }
 0x161   : > { %v2289_v43 = vadd.f32 %v2252_v27, %v2151_v52  ;;  %v1846_v22 = vadd.f32 %v1810_v32, %v4228_v34 }
 0x162   : > { %v2384_v49 = vpop.f32.mrf.mxu0 }
 0x163   : > { %v4370_v30 = vadd.f32 %v2382_v28, %v2289_v43 }
 0x165   : > { %2435 = vst [vmem:[%s4358_s9 + $0x10] sm:$0xff] %v4370_v30 }
 0x166   : > { %v2116_v42 = vpop.f32.mrf.mxu2 }
 0x167   : > { %v2152_v61 = vadd.f32 %v2116_v42, %v1846_v22 }
 0x168   : > { %v2254_v1 = vpop.f32.mrf.mxu3  ;;  %v1813_v37 = vpop.f32.mrf.mxu1 }
 0x169   : > { %v2290_v31 = vadd.f32 %v2254_v1, %v2152_v61  ;;  %v1847_v6 = vadd.f32 %v1813_v37, %v4237_v33 }
 0x16a   : > { %v2387_v48 = vpop.f32.mrf.mxu0 }
 0x16b   : > { %v4375_v19 = vadd.f32 %v2384_v49, %v2290_v31 }
 0x16d   : > { %2436 = vst [vmem:[%s4358_s9 + $0x18] sm:$0xff] %v4375_v19 }
 0x16e   : > { %v2119_v21 = vpop.f32.mrf.mxu2 }
 0x16f   : > { %v2153_v26 = vadd.f32 %v2119_v21, %v1847_v6 }
 0x170   : > { %v2257_v16 = vpop.f32.mrf.mxu3  ;;  %v1815_v46 = vpop.f32.mrf.mxu1 }
 0x171   : > { %v2291_v3 = vadd.f32 %v2257_v16, %v2153_v26  ;;  %v1848_v60 = vadd.f32 %v1815_v46, %v4253_v58 }
 0x172   : > { %v2389_v34 = vpop.f32.mrf.mxu0 }
 0x173   : > { %v4380_v4 = vadd.f32 %v2387_v48, %v2291_v3 }
 0x175   : > { %2437 = vst [vmem:[%s4358_s9 + $0x20] sm:$0xff] %v4380_v4 }
 0x176   : > { %v2121_v35 = vpop.f32.mrf.mxu2 }
 0x177   : > { %v2154_v63 = vadd.f32 %v2121_v35, %v1848_v60 }
 0x178   : > { %v2259_v45 = vpop.f32.mrf.mxu3  ;;  %v1818_v17 = vpop.f32.mrf.mxu1 }
 0x179   : > { %v2292_v41 = vadd.f32 %v2259_v45, %v2154_v63  ;;  %v1849_v23 = vadd.f32 %v1818_v17, %v4262_v57 }
 0x17a   : > { %v2392_v33 = vpop.f32.mrf.mxu0 }
 0x17b   : > { %v4385_v20 = vadd.f32 %v2389_v34, %v2292_v41 }
 0x17d   : > { %2438 = vst [vmem:[%s4358_s9 + $0x28] sm:$0xff] %v4385_v20 }
 0x17e   : > { %v2124_v40 = vpop.f32.mrf.mxu2 }
 0x17f   : > { %v2155_v44 = vadd.f32 %v2124_v40, %v1849_v23 }
 0x180   : > { %v2262_v47 = vpop.f32.mrf.mxu3  ;;  %v1820_v11 = vpop.f32.mrf.mxu1 }
 0x181   : > { %v2293_v29 = vadd.f32 %v2262_v47, %v2155_v44  ;;  %v1850_v5 = vadd.f32 %v1820_v11, %v4277_v25 }
 0x182   : > { %v2394_v58 = vpop.f32.mrf.mxu0 }
 0x183   : > { %v4390_v50 = vadd.f32 %v2392_v33, %v2293_v29 }
 0x185   : > { %2439 = vst [vmem:[%s4358_s9 + $0x30] sm:$0xff] %v4390_v50 }
 0x186   : > { %v2126_v62 = vpop.f32.mrf.mxu2 }
 0x187   : > { %v2156_v59 = vadd.f32 %v2126_v62, %v1850_v5 }
 0x188   : > { %v2264_v7 = vpop.f32.mrf.mxu3  ;;  %v1823_v36 = vpop.f32.mrf.mxu1 }
 0x189   : > { %v2294_v54 = vadd.f32 %v2264_v7, %v2156_v59  ;;  %v1851_v18 = vadd.f32 %v1823_v36, %v4286_v39 }
 0x18a   : > { %v2397_v57 = vpop.f32.mrf.mxu0 }
 0x18b   : > { %v4395_v38 = vadd.f32 %v2394_v58, %v2294_v54 }
 0x18d   : > { %2440 = vst [vmem:[%s4358_s9 + $0x38] sm:$0xff] %v4395_v38 }
 0x18e   : > { %v2129_v55 = vpop.f32.mrf.mxu2 }
 0x18f   : > { %v2157_v10 = vadd.f32 %v2129_v55, %v1851_v18 }
 0x190   : > { %v2267_v51 = vpop.f32.mrf.mxu3  ;;  %v1825_v28 = vpop.f32.mrf.mxu1 }
 0x191   : > { %v2295_v13 = vadd.f32 %v2267_v51, %v2157_v10  ;;  %v1852_v52 = vadd.f32 %v1825_v28, %v4302_v15 }
 0x192   : > { %v2399_v25 = vpop.f32.mrf.mxu0 }
 0x193   : > { %v4400_v24 = vadd.f32 %v2397_v57, %v2295_v13 }
 0x195   : > { %2441 = vst [vmem:[%s4358_s9 + $0x40] sm:$0xff] %v4400_v24 }
 0x196   : > { %v2131_v27 = vpop.f32.mrf.mxu2 }
 0x197   : > { %v2158_v32 = vadd.f32 %v2131_v27, %v1852_v52 }
 0x198   : > { %v2269_v43 = vpop.f32.mrf.mxu3  ;;  %v1828_v49 = vpop.f32.mrf.mxu1 }
 0x199   : > { %v2296_v22 = vadd.f32 %v2269_v43, %v2158_v32  ;;  %v1853_v61 = vadd.f32 %v1828_v49, %v4311_v0 }
 0x19a   : > { %v2402_v39 = vpop.f32.mrf.mxu0 }
 0x19b   : > { %v4405_v42 = vadd.f32 %v2399_v25, %v2296_v22 }
 0x19d   : > { %2442 = vst [vmem:[%s4358_s9 + $0x48] sm:$0xff] %v4405_v42 }
 0x19e   : > { %v2134_v1 = vpop.f32.mrf.mxu2 }
 0x19f   : > { %v2159_v37 = vadd.f32 %v2134_v1, %v1853_v61 }
 0x1a0   : > { %v2272_v31 = vpop.f32.mrf.mxu3  ;;  %v1830_v48 = vpop.f32.mrf.mxu1 }
 0x1a1   : > { %v2297_v6 = vadd.f32 %v2272_v31, %v2159_v37  ;;  %v1854_v26 = vadd.f32 %v1830_v48, %v4324_v12 }
 0x1a2   : > { %v2404_v15 = vpop.f32.mrf.mxu0 }
 0x1a3   : > { %v4410_v21 = vadd.f32 %v2402_v39, %v2297_v6 }
 0x1a5   : > { %2443 = vst [vmem:[%s4358_s9 + $0x50] sm:$0xff] %v4410_v21 }
 0x1a6   : > { %v2136_v16 = vpop.f32.mrf.mxu2 }
 0x1a7   : > { %v2160_v46 = vadd.f32 %v2136_v16, %v1854_v26 }
 0x1a8   : > { %v2274_v3 = vpop.f32.mrf.mxu3  ;;  %v1833_v34 = vpop.f32.mrf.mxu1 }
 0x1a9   : > { %v2298_v60 = vadd.f32 %v2274_v3, %v2160_v46  ;;  %v1855_v63 = vadd.f32 %v1833_v34, %v4330_v8 }
 0x1aa   : > { %v2407_v35 = vpop.f32.mrf.mxu0 }
 0x1ab   : > { %v4415_v0 = vadd.f32 %v2404_v15, %v2298_v60 }
 0x1ad   : > { %2444 = vst [vmem:[%s4358_s9 + $0x58] sm:$0xff] %v4415_v0 }
 0x1ae   : > { %v2139_v45 = vpop.f32.mrf.mxu2 }
 0x1af   : > { %v2161_v17 = vadd.f32 %v2139_v45, %v1855_v63 }
 0x1b0   : > { %v2277_v41 = vpop.f32.mrf.mxu3  ;;  %v1835_v33 = vpop.f32.mrf.mxu1 }
 0x1b1   : > { %v2299_v23 = vadd.f32 %v2277_v41, %v2161_v17  ;;  %v1856_v40 = vadd.f32 %v1835_v33, %v4344_v56 }
 0x1b2   : > { %v2409_v44 = vpop.f32.mrf.mxu0 }
 0x1b3   : > { %v4420_v12 = vadd.f32 %v2407_v35, %v2299_v23 }
 0x1b5   : > { %2445 = vst [vmem:[%s4358_s9 + $0x60] sm:$0xff] %v4420_v12 }
 0x1b6   : > { %v2141_v47 = vpop.f32.mrf.mxu2 }
 0x1b7   : > { %v2162_v11 = vadd.f32 %v2141_v47, %v1856_v40 }
 0x1b8   : > { %v2279_v29 = vpop.f32.mrf.mxu3  ;;  %v1838_v58 = vpop.f32.mrf.mxu1 }
 0x1b9   : > { %v2300_v5 = vadd.f32 %v2279_v29, %v2162_v11  ;;  %v1857_v62 = vadd.f32 %v1838_v58, %v4348_v9 }
 0x1ba   : > { %v2412_v54 = vpop.f32.mrf.mxu0 }
 0x1bb   : > { %v2430_v8 = vadd.f32 %v2409_v44, %v2300_v5 }
 0x1bd   : > { %2446 = vst [vmem:[%s4358_s9 + $0x68] sm:$0xff] %v2430_v8 }
 0x1be   : > { %v2144_v59 = vpop.f32.mrf.mxu2 }
 0x1bf   : > { %v2163_v7 = vadd.f32 %v2144_v59, %v1857_v62 }
 0x1c0   : > { %v2282_v36 = vpop.f32.mrf.mxu3  ;;  %v1840_v18 = vpop.f32.mrf.mxu1 }
 0x1c1   : > { %v2301_v57 = vadd.f32 %v2282_v36, %v2163_v7  ;;  %v1858_v56 = vadd.f32 %v1840_v18, %v4351_v53 }
 0x1c2   : > { %v2414_v25 = vpop.f32.mrf.mxu0 }
 0x1c3   : > { %v2431_v55 = vadd.f32 %v2412_v54, %v2301_v57 }
 0x1c5   : > { %2447 = vst [vmem:[%s4358_s9 + $0x70] sm:$0xff] %v2431_v55 }
 0x1c6   : > { %v2146_v10 = vpop.f32.mrf.mxu2 }
 0x1c7   : > { %v2164_v51 = vadd.f32 %v2146_v10, %v1858_v56 }
 0x1c8   : > { %v2284_v28 = vpop.f32.mrf.mxu3 }
 0x1c9   : > { %v2302_v13 = vadd.f32 %v2284_v28, %v2164_v51  ;;  %2452 = sbr.rel (%p3160_p4) target bundleno = 464 (0x1d0), region = 40 }
 0x1cb   : > { %v2432_v52 = vadd.f32 %v2414_v25, %v2302_v13 }
 0x1cd   : > { %2448 = vst [vmem:[%s4358_s9 + $0x78] sm:$0xff] %v2432_v52 }
 0x1ce   : > { %v3304_v9 = vmov 0.0  }
 0x1cf   : > { %2453 = vst [vmem:[%s4489_s5] sm:$0x3] %v3304_v9 }
 0x1d0 PF: > { %v2454_v53 = vadd.f32 %v4365_v14, %v4360_v2  ;;  %v2475_v27 = vmul.f32 %v4360_v2, %v4360_v2  ;;  %v2476_v32 = vmul.f32 %v4365_v14, %v4365_v14  ;;  %v2477_v49 = vmul.f32 %v4370_v30, %v4370_v30 }
 0x1d1   : > { %v2478_v39 = vmul.f32 %v4375_v19, %v4375_v19  ;;  %v2479_v37 = vmul.f32 %v4380_v4, %v4380_v4  ;;  %v2480_v14 = vmul.f32 %v4385_v20, %v4385_v20  ;;  %v2481_v6 = vmul.f32 %v4390_v50, %v4390_v50 }
 0x1d2   : > { %v2455_v43 = vadd.f32 %v2454_v53, %v4370_v30  ;;  %v2491_v61 = vadd.f32 %v2476_v32, %v2475_v27  ;;  %v2482_v26 = vmul.f32 %v4395_v38, %v4395_v38  ;;  %v2483_v46 = vmul.f32 %v4400_v24, %v4400_v24 }
 0x1d3   : > { %v2484_v34 = vmul.f32 %v4405_v42, %v4405_v42  ;;  %v2485_v35 = vmul.f32 %v4410_v21, %v4410_v21  ;;  %v2486_v45 = vmul.f32 %v4415_v0, %v4415_v0  ;;  %v2487_v41 = vmul.f32 %v4420_v12, %v4420_v12 }
 0x1d4   : > { %v2456_v22 = vadd.f32 %v2455_v43, %v4375_v19  ;;  %v2492_v2 = vadd.f32 %v2491_v61, %v2477_v49  ;;  %v2488_v23 = vmul.f32 %v2430_v8, %v2430_v8  ;;  %v2489_v47 = vmul.f32 %v2431_v55, %v2431_v55 }
 0x1d5   : > { %v2490_v29 = vmul.f32 %v2432_v52, %v2432_v52  ;;  %vm4632_vm4 = vcmask 1040384  }
 0x1d6   : > { %v2457_v1 = vadd.f32 %v2456_v22, %v4380_v4  ;;  %v2493_v48 = vadd.f32 %v2492_v2, %v2478_v39 }
 0x1d8   : > { %v2458_v31 = vadd.f32 %v2457_v1, %v4385_v20  ;;  %v2494_v15 = vadd.f32 %v2493_v48, %v2479_v37 }
 0x1da   : > { %v2459_v30 = vadd.f32 %v2458_v31, %v4390_v50  ;;  %v2495_v16 = vadd.f32 %v2494_v15, %v2480_v14 }
 0x1dc   : > { %v2460_v19 = vadd.f32 %v2459_v30, %v4395_v38  ;;  %v2496_v3 = vadd.f32 %v2495_v16, %v2481_v6 }
 0x1de   : > { %v2461_v4 = vadd.f32 %v2460_v19, %v4400_v24  ;;  %v2497_v60 = vadd.f32 %v2496_v3, %v2482_v26 }
 0x1e0   : > { %v2462_v20 = vadd.f32 %v2461_v4, %v4405_v42  ;;  %v2498_v63 = vadd.f32 %v2497_v60, %v2483_v46 }
 0x1e2   : > { %v2463_v50 = vadd.f32 %v2462_v20, %v4410_v21  ;;  %v2499_v17 = vadd.f32 %v2498_v63, %v2484_v34 }
 0x1e4   : > { %v2464_v38 = vadd.f32 %v2463_v50, %v4415_v0  ;;  %v2500_v33 = vadd.f32 %v2499_v17, %v2485_v35 }
 0x1e6   : > { %v2465_v24 = vadd.f32 %v2464_v38, %v4420_v12  ;;  %v2501_v40 = vadd.f32 %v2500_v33, %v2486_v45 }
 0x1e8   : > { %v2466_v42 = vadd.f32 %v2465_v24, %v2430_v8  ;;  %v2502_v11 = vadd.f32 %v2501_v40, %v2487_v41 }
 0x1ea   : > { %v2467_v44 = vadd.f32 %v2466_v42, %v2431_v55  ;;  %v2503_v58 = vadd.f32 %v2502_v11, %v2488_v23  ;;  %v2512_v55 = vld [vmem:[%s4489_s5] sm:$0x3] }
 0x1ec   : > { %v2468_v21 = vadd.f32 %v2467_v44, %v2432_v52  ;;  %v2504_v62 = vadd.f32 %v2503_v58, %v2489_v47 }
 0x1ee   : > { %v2469_v5 = vrot.slane %v2468_v21, 4  ;;  %v2505_v0 = vadd.f32 %v2504_v62, %v2490_v29 }
 0x1f0   : > { %v2470_v59 = vadd.f32 %v2469_v5, %v2468_v21  ;;  %v2506_v36 = vrot.slane %v2505_v0, 4 }
 0x1f2   : > { %v2471_v7 = vrot.slane %v2470_v59, 2  ;;  %v2507_v57 = vadd.f32 %v2506_v36, %v2505_v0 }
 0x1f4   : > { %v2472_v54 = vadd.f32 %v2471_v7, %v2470_v59  ;;  %v2508_v12 = vrot.slane %v2507_v57, 2 }
 0x1f6   : > { %v2473_v18 = vrot.slane %v2472_v54, 1  ;;  %v2509_v56 = vadd.f32 %v2508_v12, %v2507_v57 }
 0x1f8   : > { %v2474_v10 = vadd.f32 %v2473_v18, %v2472_v54  ;;  %v2510_v8 = vrot.slane %v2509_v56, 1 }
 0x1fa   : > { %v2511_v51 = vadd.f32 %v2510_v8, %v2509_v56 }
 0x1fc   : > { %v2514_v28 = vsel %vm4632_vm4, %v2474_v10, %v2511_v51 }
 0x1fd   : > { %v2515_v13 = vadd.f32 %v2514_v28, %v2512_v55 }
 0x1ff   : > { %2516 = vst [vmem:[%s4489_s5] sm:$0x3] %v2515_v13 }
 0x200 PF: > { %s16_s18 = sadd.s32 1, %s3300_s18  }
 0x201   : > { %p13_p5 = scmp.ge.s32.totalorder %s16_s18, 6  }
 0x203   :  { %15 = sbr.rel (!%p13_p5) target bundleno = 1 (0x1), region = 92 }

</bundles_post_ra>
